<compile_context>
chip_gen: v6e
topology: v6e:2x2x1
jax: 0.10.0
libtpu: 0.0.40
codegen_flags: <defaults>
</compile_context>

<pallas_src>
import itertools

import jax
import jax.numpy as jnp
from jax.experimental import pallas as pl
from jax.experimental.pallas import tpu as pltpu


def _round_up(n, m):
    return (n + m - 1) // m * m


VMEM_LIMIT = 32 * 1024 * 1024  # fits the v7x scoped-VMEM budget (64 MiB phys)


# ---------------------------------------------------------------------------
# Pallas kernels
# ---------------------------------------------------------------------------

def conv_relu_pool_kernel(patch_ref, w_ref, b_ref, out_ref):
    """Fused conv3d (matmul over im2col patches) + bias + ReLU + 2x2x2 maxpool.

    patch_ref : (ROW_TILE*8, KPAD) bf16  rows ordered (pooled-row, window-pos)
    w_ref     : (KPAD, CPAD)       bf16  conv weight, K and Cout zero-padded
    b_ref     : (1, CPAD)          f32
    out_ref   : (ROW_TILE, CPAD)   bf16  pooled, channel-last, lane-dense
    """
    acc = jnp.dot(patch_ref[...], w_ref[...], preferred_element_type=jnp.float32)
    acc = jnp.maximum(acc + b_ref[...], 0.0)                 # f32 epilogue
    rt, cpad = out_ref.shape
    # max over the 8 pooling-window positions (sublane reduce, XLU slot)
    pooled = jnp.max(acc.reshape(rt, 8, cpad), axis=1)
    out_ref[...] = pooled.astype(out_ref.dtype)


def mlp_kernel(x_ref, w1_ref, b1_ref, w2_ref, b2_ref, out_ref, acc_ref):
    """fc1 (K-tiled, f32 accumulate) + ReLU + fc2 as a VPU lane reduction."""
    k = pl.program_id(0)

    @pl.when(k == 0)
    def _init():
        acc_ref[...] = jnp.zeros_like(acc_ref)

    acc_ref[...] += jnp.dot(x_ref[...], w1_ref[...],
                            preferred_element_type=jnp.float32)

    @pl.when(k == pl.num_programs(0) - 1)
    def _finalize():
        h = jnp.maximum(acc_ref[...] + b1_ref[...], 0.0)     # (B, HID) f32
        # fc2: N=1, so do it as an elementwise mul + lane reduction
        out_ref[...] = (jnp.sum(h * w2_ref[...], axis=-1, keepdims=True)
                        + b2_ref[...])


# ---------------------------------------------------------------------------
# Wrappers
# ---------------------------------------------------------------------------

def conv_relu_pool(x, w_conv, b_conv):
    """x: (B, Cin, D, H, W) NCDHW.  conv3d k=3/s=1/p=1 + ReLU + maxpool 2x2x2.

    Returns (B*D2*H2*W2, CPAD) bf16, rows ordered (b, d2, h2, w2), channels
    (first Cout real, rest zero-padded) on the lane axis.
    """
    B, Cin, D, H, W = x.shape
    Cout = w_conv.shape[0]
    assert D % 2 == 0 and H % 2 == 0 and W % 2 == 0
    D2, H2, W2 = D // 2, H // 2, W // 2
    K = Cin * 27
    KPAD = _round_up(K, 128)       # contraction dim padded -> full MXU passes
    CPAD = _round_up(Cout, 128)    # output channels padded -> lane-dense stores

    # --- im2col (XLA side; tiny at this scale, see TODO above) -------------
    xp = jnp.pad(x, ((0, 0), (0, 0), (1, 1), (1, 1), (1, 1)))
    slices = [xp[:, :, kd:kd + D, kh:kh + H, kw:kw + W]
              for kd, kh, kw in itertools.product(range(3), range(3), range(3))]
    patches = jnp.stack(slices, axis=-1)                      # (B,Cin,D,H,W,27)
    patches = jnp.transpose(patches, (0, 2, 3, 4, 1, 5))      # (B,D,H,W,Cin,27)
    # group the 2x2x2 pooling window next to each pooled output location
    patches = patches.reshape(B, D2, 2, H2, 2, W2, 2, K)
    patches = jnp.transpose(patches, (0, 1, 3, 5, 2, 4, 6, 7))  # (B,D2,H2,W2,2,2,2,K)
    patches = patches.reshape(B * D2 * H2 * W2 * 8, K)
    patches = jnp.pad(patches, ((0, 0), (0, KPAD - K))).astype(jnp.bfloat16)

    # PyTorch conv weight (Cout, Cin, kD, kH, kW) -> (K, Cout), K/Cout padded
    w_mat = w_conv.reshape(Cout, K).T
    w_mat = jnp.pad(w_mat, ((0, KPAD - K), (0, CPAD - Cout))).astype(jnp.bfloat16)
    b_mat = jnp.pad(b_conv.reshape(1, Cout),
                    ((0, 0), (0, CPAD - Cout))).astype(jnp.float32)

    NPOOL = B * D2 * H2 * W2
    # 32 pooled rows -> 256 conv rows per tile; bump to 64-256 pooled rows per
    # tile at real video sizes (budgeted against v7x's 64 MiB VMEM).
    ROW_TILE = 32 if NPOOL % 32 == 0 else NPOOL
    grid = (NPOOL // ROW_TILE,)

    return pl.pallas_call(
        conv_relu_pool_kernel,
        out_shape=jax.ShapeDtypeStruct((NPOOL, CPAD), jnp.bfloat16),
        grid_spec=pltpu.PrefetchScalarGridSpec(
            num_scalar_prefetch=0,
            grid=grid,
            in_specs=[
                pl.BlockSpec((ROW_TILE * 8, KPAD), lambda i: (i, 0)),
                pl.BlockSpec((KPAD, CPAD), lambda i: (0, 0)),   # weight resident
                pl.BlockSpec((1, CPAD), lambda i: (0, 0)),
            ],
            out_specs=pl.BlockSpec((ROW_TILE, CPAD), lambda i: (i, 0)),
        ),
        compiler_params=pltpu.CompilerParams(
            dimension_semantics=("parallel",),
            vmem_limit_bytes=VMEM_LIMIT),
    )(patches, w_mat, b_mat)


def mlp_head(x_feat, w1_eff, b1, w2_row, b2):
    """relu(x @ w1 + b1) @ w2 + b2 with the fc1 contraction tiled over a grid."""
    B, FEFF = x_feat.shape
    HID = w1_eff.shape[1]
    FT = 2048 if FEFF % 2048 == 0 else FEFF
    grid = (FEFF // FT,)

    return pl.pallas_call(
        mlp_kernel,
        out_shape=jax.ShapeDtypeStruct((B, 1), jnp.float32),
        grid_spec=pltpu.PrefetchScalarGridSpec(
            num_scalar_prefetch=0,
            grid=grid,
            in_specs=[
                pl.BlockSpec((B, FT), lambda k: (0, k)),
                pl.BlockSpec((FT, HID), lambda k: (k, 0)),
                pl.BlockSpec((1, HID), lambda k: (0, 0)),
                pl.BlockSpec((1, HID), lambda k: (0, 0)),
                pl.BlockSpec((1, 1), lambda k: (0, 0)),
            ],
            out_specs=pl.BlockSpec((B, 1), lambda k: (0, 0)),
            scratch_shapes=[pltpu.VMEM((B, HID), jnp.float32)],
        ),
        compiler_params=pltpu.CompilerParams(
            dimension_semantics=("arbitrary",),   # reduction axis
            vmem_limit_bytes=VMEM_LIMIT),
    )(x_feat, w1_eff, b1, w2_row, b2)


def videonet_forward(x, params):
    """x: (B, 3, D, H, W) float32 (NCDHW, PyTorch convention)."""
    B, _, D, H, W = x.shape
    D2, H2, W2 = D // 2, H // 2, W // 2
    Cout = params["conv_w"].shape[0]
    HID = params["fc1_w"].shape[1]

    pooled = conv_relu_pool(x, params["conv_w"], params["conv_b"])
    CPAD = pooled.shape[-1]
    S = D2 * H2 * W2

    # Channel-last flatten of the pooled features is a FREE reshape (no
    # activation transpose): rows are already (b, d2, h2, w2), lanes are c.
    feats = pooled.reshape(B, S * CPAD)

    # Re-index fc1's weight once at trace time from PyTorch's NCDHW flatten
    # order (c, d2, h2, w2) to our channel-last order (d2, h2, w2, c_padded);
    # padded-channel rows are zero so the result is numerically identical.
    w1 = params["fc1_w"].reshape(Cout, D2, H2, W2, HID)
    w1 = jnp.transpose(w1, (1, 2, 3, 0, 4))                  # (D2,H2,W2,Cout,HID)
    w1 = jnp.pad(w1, ((0, 0), (0, 0), (0, 0), (0, CPAD - Cout), (0, 0)))
    w1 = w1.reshape(S * CPAD, HID).astype(jnp.bfloat16)

    b1 = params["fc1_b"].reshape(1, HID).astype(jnp.float32)
    w2_row = params["fc2_w"].reshape(1, HID).astype(jnp.float32)
    b2 = params["fc2_b"].reshape(1, 1).astype(jnp.float32)

    return mlp_head(feats, w1, b1, w2_row, b2)


# ---------------------------------------------------------------------------
# Main
# ---------------------------------------------------------------------------

if __name__ == "__main__":
    B, Cin, D, H, W = 2, 3, 4, 8, 8
    Cout, HID = 32, 128
    D2, H2, W2 = D // 2, H // 2, W // 2
    F = Cout * D2 * H2 * W2   # fc1 in-features (scaled-down analogue of 32*2500*56*56)

    key = jax.random.PRNGKey(0)
    ks = jax.random.split(key, 6)
    x = jax.random.normal(ks[0], (B, Cin, D, H, W), jnp.float32)

    params = {
        "conv_w": 0.10 * jax.random.normal(ks[1], (Cout, Cin, 3, 3, 3), jnp.float32),
        "conv_b": 0.01 * jax.random.normal(ks[2], (Cout,), jnp.float32),
        "fc1_w": 0.05 * jax.random.normal(ks[3], (F, HID), jnp.float32),
        "fc1_b": jnp.zeros((HID,), jnp.float32),
        "fc2_w": 0.05 * jax.random.normal(ks[4], (HID, 1), jnp.float32),
        "fc2_b": jnp.zeros((1,), jnp.float32),
    }

    out = jax.jit(videonet_forward)(x, params)
    out = jax.block_until_ready(out)
    assert out.shape == (B, 1), out.shape
    assert out.dtype == jnp.float32
    print("KERNEL_OK")
</pallas_src>

<mosaic_0001>
module attributes {stable_mosaic.version = 11 : i64} {
  func.func @conv_relu_pool_kernel(%arg0: i32, %arg1: memref<256x128xbf16, #tpu.memory_space<vmem>>, %arg2: memref<128x128xbf16, #tpu.memory_space<vmem>>, %arg3: memref<1x128xf32, #tpu.memory_space<vmem>>, %arg4: memref<32x128xbf16, #tpu.memory_space<vmem>>) attributes {dimension_semantics = [#tpu.dimension_semantics<parallel>], iteration_bounds = array<i64: 2>, scalar_prefetch = 0 : i64, scratch_operands = 0 : i64, tpu.core_type = #tpu.core_type<tc>, window_params = [{transform_indices = @transform_0, window_bounds = array<i64: 256, 128>}, {pipeline_mode = #tpu.pipeline_mode<synchronous>, transform_indices = @transform_1, window_bounds = array<i64: 128, 128>}, {pipeline_mode = #tpu.pipeline_mode<synchronous>, transform_indices = @transform_2, window_bounds = array<i64: 1, 128>}, {transform_indices = @transform_3, window_bounds = array<i64: 32, 128>}]} {
    %c0 = arith.constant 0 : index
    %c0_0 = arith.constant 0 : index
    %0 = vector.load %arg1[%c0, %c0_0] : memref<256x128xbf16, #tpu.memory_space<vmem>>, vector<256x128xbf16>
    %c0_1 = arith.constant 0 : index
    %c0_2 = arith.constant 0 : index
    %1 = vector.load %arg2[%c0_1, %c0_2] : memref<128x128xbf16, #tpu.memory_space<vmem>>, vector<128x128xbf16>
    %cst = arith.constant dense<0.000000e+00> : vector<256x128xf32>
    %2 = tpu.matmul %0, %1, %cst {dimension_numbers = #tpu.dot_dimension_numbers<[1], [0], [0], [1], [0, 0, 1, 1], [], []>} : vector<256x128xbf16>, vector<128x128xbf16>, vector<256x128xf32> -> vector<256x128xf32>
    %c0_3 = arith.constant 0 : index
    %c0_4 = arith.constant 0 : index
    %3 = vector.load %arg3[%c0_3, %c0_4] : memref<1x128xf32, #tpu.memory_space<vmem>>, vector<1x128xf32>
    %4 = vector.broadcast %3 : vector<1x128xf32> to vector<256x128xf32>
    %5 = arith.addf %2, %4 : vector<256x128xf32>
    %cst_5 = arith.constant 0.000000e+00 : f32
    %6 = vector.broadcast %cst_5 : f32 to vector<256x128xf32>
    %7 = arith.maximumf %5, %6 : vector<256x128xf32>
    %8 = vector.shape_cast %7 : vector<256x128xf32> to vector<32x8x128xf32>
    %cst_6 = arith.constant dense<0xFF800000> : vector<32x128xf32>
    %9 = vector.multi_reduction <maximumf>, %8, %cst_6 [1] : vector<32x8x128xf32> to vector<32x128xf32>
    %10 = arith.truncf %9 : vector<32x128xf32> to vector<32x128xbf16>
    %c0_7 = arith.constant 0 : index
    %c0_8 = arith.constant 0 : index
    %11 = vector.load %arg4[%c0_7, %c0_8] : memref<32x128xbf16, #tpu.memory_space<vmem>>, vector<32x128xbf16>
    tpu.vector_store %arg4[%c0_7, %c0_8], %10 {strides = array<i32>} : memref<32x128xbf16, #tpu.memory_space<vmem>>, vector<32x128xbf16>,
    return
  }
  func.func @transform_0(%arg0: i32) -> (i32, i32) {
    %c0_i32 = arith.constant 0 : i32
    %c0_i32_0 = arith.constant 0 : i32
    return %arg0, %c0_i32 : i32, i32
  }
  func.func @transform_1(%arg0: i32) -> (i32, i32) {
    %c0_i32 = arith.constant 0 : i32
    %c0_i32_0 = arith.constant 0 : i32
    %c0_i32_1 = arith.constant 0 : i32
    return %c0_i32, %c0_i32_0 : i32, i32
  }
  func.func @transform_2(%arg0: i32) -> (i32, i32) {
    %c0_i32 = arith.constant 0 : i32
    %c0_i32_0 = arith.constant 0 : i32
    %c0_i32_1 = arith.constant 0 : i32
    return %c0_i32, %c0_i32_0 : i32, i32
  }
  func.func @transform_3(%arg0: i32) -> (i32, i32) {
    %c0_i32 = arith.constant 0 : i32
    %c0_i32_0 = arith.constant 0 : i32
    return %arg0, %c0_i32 : i32, i32
  }
}

module attributes {stable_mosaic.version = 11 : i64} {
  func.func @mlp_kernel(%arg0: i32, %arg1: memref<2x2048xbf16, #tpu.memory_space<vmem>>, %arg2: memref<2048x128xbf16, #tpu.memory_space<vmem>>, %arg3: memref<1x128xf32, #tpu.memory_space<vmem>>, %arg4: memref<1x128xf32, #tpu.memory_space<vmem>>, %arg5: memref<1x1xf32, #tpu.memory_space<vmem>>, %arg6: memref<2x1xf32, #tpu.memory_space<vmem>>, %arg7: memref<2x128xf32, #tpu.memory_space<vmem>>) attributes {dimension_semantics = [#tpu.dimension_semantics<arbitrary>], iteration_bounds = array<i64: 2>, scalar_prefetch = 0 : i64, scratch_operands = 1 : i64, tpu.core_type = #tpu.core_type<tc>, window_params = [{transform_indices = @transform_0, window_bounds = array<i64: 2, 2048>}, {transform_indices = @transform_1, window_bounds = array<i64: 2048, 128>}, {pipeline_mode = #tpu.pipeline_mode<synchronous>, transform_indices = @transform_2, window_bounds = array<i64: 1, 128>}, {pipeline_mode = #tpu.pipeline_mode<synchronous>, transform_indices = @transform_3, window_bounds = array<i64: 1, 128>}, {pipeline_mode = #tpu.pipeline_mode<synchronous>, transform_indices = @transform_4, window_bounds = array<i64: 1, 1>}, {pipeline_mode = #tpu.pipeline_mode<synchronous>, transform_indices = @transform_5, window_bounds = array<i64: 2, 1>}]} {
    %c0_i32 = arith.constant 0 : i32
    %0 = arith.cmpi eq, %arg0, %c0_i32 : i32
    %1 = arith.extui %0 : i1 to i32
    %c0_i32_0 = arith.constant 0 : i32
    %2 = arith.cmpi ne, %1, %c0_i32_0 : i32
    scf.if %2 {
      %cst_9 = arith.constant 0.000000e+00 : f32
      %12 = vector.broadcast %cst_9 : f32 to vector<2x128xf32>
      %c0_10 = arith.constant 0 : index
      %c0_11 = arith.constant 0 : index
      %13 = vector.load %arg7[%c0_10, %c0_11] : memref<2x128xf32, #tpu.memory_space<vmem>>, vector<2x128xf32>
      tpu.vector_store %arg7[%c0_10, %c0_11], %12 {strides = array<i32>} : memref<2x128xf32, #tpu.memory_space<vmem>>, vector<2x128xf32>,
    } else {
    }
    %c0 = arith.constant 0 : index
    %c0_1 = arith.constant 0 : index
    %3 = vector.load %arg7[%c0, %c0_1] : memref<2x128xf32, #tpu.memory_space<vmem>>, vector<2x128xf32>
    %c0_2 = arith.constant 0 : index
    %c0_3 = arith.constant 0 : index
    %4 = vector.load %arg1[%c0_2, %c0_3] : memref<2x2048xbf16, #tpu.memory_space<vmem>>, vector<2x2048xbf16>
    %c0_4 = arith.constant 0 : index
    %c0_5 = arith.constant 0 : index
    %5 = vector.load %arg2[%c0_4, %c0_5] : memref<2048x128xbf16, #tpu.memory_space<vmem>>, vector<2048x128xbf16>
    %cst = arith.constant dense<0.000000e+00> : vector<2x128xf32>
    %6 = tpu.matmul %4, %5, %cst {dimension_numbers = #tpu.dot_dimension_numbers<[1], [0], [0], [1], [0, 0, 1, 1], [], []>} : vector<2x2048xbf16>, vector<2048x128xbf16>, vector<2x128xf32> -> vector<2x128xf32>
    %7 = arith.addf %3, %6 : vector<2x128xf32>
    %c0_6 = arith.constant 0 : index
    %c0_7 = arith.constant 0 : index
    %8 = vector.load %arg7[%c0_6, %c0_7] : memref<2x128xf32, #tpu.memory_space<vmem>>, vector<2x128xf32>
    tpu.vector_store %arg7[%c0_6, %c0_7], %7 {strides = array<i32>} : memref<2x128xf32, #tpu.memory_space<vmem>>, vector<2x128xf32>,
    %c1_i32 = arith.constant 1 : i32
    %9 = arith.cmpi eq, %arg0, %c1_i32 : i32
    %10 = arith.extui %9 : i1 to i32
    %c0_i32_8 = arith.constant 0 : i32
    %11 = arith.cmpi ne, %10, %c0_i32_8 : i32
    scf.if %11 {
      %c0_9 = arith.constant 0 : index
      %c0_10 = arith.constant 0 : index
      %12 = vector.load %arg7[%c0_9, %c0_10] : memref<2x128xf32, #tpu.memory_space<vmem>>, vector<2x128xf32>
      %c0_11 = arith.constant 0 : index
      %c0_12 = arith.constant 0 : index
      %13 = vector.load %arg3[%c0_11, %c0_12] : memref<1x128xf32, #tpu.memory_space<vmem>>, vector<1x128xf32>
      %14 = vector.broadcast %13 : vector<1x128xf32> to vector<2x128xf32>
      %15 = arith.addf %12, %14 : vector<2x128xf32>
      %cst_13 = arith.constant 0.000000e+00 : f32
      %16 = vector.broadcast %cst_13 : f32 to vector<2x128xf32>
      %17 = arith.maximumf %15, %16 : vector<2x128xf32>
      %c0_14 = arith.constant 0 : index
      %c0_15 = arith.constant 0 : index
      %18 = vector.load %arg4[%c0_14, %c0_15] : memref<1x128xf32, #tpu.memory_space<vmem>>, vector<1x128xf32>
      %19 = vector.broadcast %18 : vector<1x128xf32> to vector<2x128xf32>
      %20 = arith.mulf %17, %19 : vector<2x128xf32>
      %cst_16 = arith.constant dense<0.000000e+00> : vector<2xf32>
      %21 = vector.multi_reduction <add>, %20, %cst_16 [1] : vector<2x128xf32> to vector<2xf32>
      %22 = vector.shape_cast %21 : vector<2xf32> to vector<2x1xf32>
      %c0_17 = arith.constant 0 : index
      %c0_18 = arith.constant 0 : index
      %23 = vector.load %arg5[%c0_17, %c0_18] : memref<1x1xf32, #tpu.memory_space<vmem>>, vector<1x1xf32>
      %24 = vector.broadcast %23 : vector<1x1xf32> to vector<2x1xf32>
      %25 = arith.addf %22, %24 : vector<2x1xf32>
      %c0_19 = arith.constant 0 : index
      %c0_20 = arith.constant 0 : index
      %26 = vector.load %arg6[%c0_19, %c0_20] : memref<2x1xf32, #tpu.memory_space<vmem>>, vector<2x1xf32>
      tpu.vector_store %arg6[%c0_19, %c0_20], %25 {strides = array<i32>} : memref<2x1xf32, #tpu.memory_space<vmem>>, vector<2x1xf32>,
    } else {
    }
    return
  }
  func.func @transform_0(%arg0: i32) -> (i32, i32) {
    %c0_i32 = arith.constant 0 : i32
    %c0_i32_0 = arith.constant 0 : i32
    return %c0_i32, %arg0 : i32, i32
  }
  func.func @transform_1(%arg0: i32) -> (i32, i32) {
    %c0_i32 = arith.constant 0 : i32
    %c0_i32_0 = arith.constant 0 : i32
    return %arg0, %c0_i32 : i32, i32
  }
  func.func @transform_2(%arg0: i32) -> (i32, i32) {
    %c0_i32 = arith.constant 0 : i32
    %c0_i32_0 = arith.constant 0 : i32
    %c0_i32_1 = arith.constant 0 : i32
    return %c0_i32, %c0_i32_0 : i32, i32
  }
  func.func @transform_3(%arg0: i32) -> (i32, i32) {
    %c0_i32 = arith.constant 0 : i32
    %c0_i32_0 = arith.constant 0 : i32
    %c0_i32_1 = arith.constant 0 : i32
    return %c0_i32, %c0_i32_0 : i32, i32
  }
  func.func @transform_4(%arg0: i32) -> (i32, i32) {
    %c0_i32 = arith.constant 0 : i32
    %c0_i32_0 = arith.constant 0 : i32
    %c0_i32_1 = arith.constant 0 : i32
    return %c0_i32, %c0_i32_0 : i32, i32
  }
  func.func @transform_5(%arg0: i32) -> (i32, i32) {
    %c0_i32 = arith.constant 0 : i32
    %c0_i32_0 = arith.constant 0 : i32
    %c0_i32_1 = arith.constant 0 : i32
    return %c0_i32, %c0_i32_0 : i32, i32
  }
}

</mosaic_0001>

<bundles_post_ra>
// kernel: videonet_forward.2
= control target key start
LH: loop header
LB: loop body
LE: loop exit
PB: predicated region body
PF: predicated region fallthrough
CT: control target
= control target key end

     0   :  { %s1270_s12 = smov 0   ;;  %s1436_s0 = inlined_call_operand.vmem [shape: bf16[512,128], index: 0, kind: input, shape index: {}]   ;;  %s1437_s1 = inlined_call_operand.vmem [shape: bf16[128,128], index: 1, kind: input, shape index: {}]   ;;  %s1438_s2 = inlined_call_operand.vmem [shape: f32[1,128], index: 2, kind: input, shape index: {}]   ;;  %s1439_s3 = inlined_call_operand.vmem [shape: bf16[64,128], index: 3, kind: output, shape index: {}]  }
   0x1 LB: > { %s1022_s13 = sadd.s32 4294967295, %s1248_s12   ;;  %p1026_p0 = scmp.ge.s32.totalorder %s1248_s12, 1  ;;  %s1248_s12 = sphi %s1270_s12, %s13_s12  }
   0x2   : > { %p138_p1 = scmp.lt.s32.totalorder %s1248_s12, 3 }
   0x4   : > { %p139_p2 = pnand %p1026_p0, %p138_p1 }
   0x5   : > { %s1027_s16 = sshll.u32 (!%p139_p2), %s1022_s13, 5  ;;  %s1349_s10 = sshll.u32 (!%p139_p2), %s1022_s13, 2 }
   0x6   : > { %142 = sbr.rel (%p139_p2) target bundleno = 332 (0x14c), region = 32  ;;  %p163_p3 = scmp.lt.s32.totalorder (!%p139_p2), %s1027_s16, 63 }
   0x7   : > { %p169_p4 = scmp.lt.s32.totalorder (!%p139_p2), %s1349_s10, 7 }
   0xb   : > { %v1218_v0 = vld [vmem:[%s1437_s1 + $0x38] sm:$0xff]   ;;  %v1219_v1 = vld [vmem:[%s1437_s1 + $0x30] sm:$0xff]   ;;  %s1441_s16 = smov (!%p163_p3, %s1027_s16), 63  ;;  %v1220_v2 = vld [vmem:[%s1437_s1 + $0x28] sm:$0xff]   ;;  %vm919_vm0 = vcmask 1041409   ;;  %vm921_vm1 = vcmask 1042434  }
   0xc   : > { %1146 = vmatprep.subr.bf16.mxu0 %v1218_v0  ;;  %1194 = vmatprep.subr.bf16.mxu1 %v1218_v0  ;;  %s1028_s21 = sshll.u32 %s1441_s16, 2  ;;  %v1221_v3 = vld [vmem:[%s1437_s1 + $0x20] sm:$0xff]   ;;  %v1222_v6 = vld [vmem:[%s1437_s1 + $0x18] sm:$0xff]   ;;  %v1223_v7 = vld [vmem:[%s1437_s1 + $0x10] sm:$0xff]   ;;  %vm923_vm2 = vcmask 1043459   ;;  %vm925_vm3 = vcmask 1044484  }
   0xd   : > { %1147 = vmatpush3.bf16.msra.mxu0 %v1218_v0  ;;  %1202 = vmatpush3.bf16.msra.mxu1 %v1218_v0  ;;  %s1292_s24 = scalar_lea.vmem %s1436_s0, %s1028_s21  ;;  %v1224_v8 = vld [vmem:[%s1437_s1 + $0x8] sm:$0xff]   ;;  %v1225_v9 = vld [vmem:[%s1437_s1] sm:$0xff]   ;;  %vm927_vm4 = vcmask 1045509   ;;  %vm929_vm5 = vcmask 1046534   ;;  %vm931_vm6 = vcmask 1047559   ;;  %s1443_s10 = smov (!%p169_p4, %s1349_s10), 7 }
   0xe   : > { %1148 = vmatprep.subr.bf16.mxu0 %v1219_v1  ;;  %1195 = vmatprep.subr.bf16.mxu1 %v1219_v1  ;;  %v1226_v4 = vld [vmem:[%s1292_s24] sm:$0xff]   ;;  %v1228_v10 = vld [vmem:[%s1292_s24 + $0x8] sm:$0xff]   ;;  %v1230_v12 = vld [vmem:[%s1292_s24 + $0x10] sm:$0xff]   ;;  %s1030_s11 = sshll.u32 %s1443_s10, 2 }
   0xf   : > { %v1227_v5 = vld [vmem:[%s1292_s24 + $0x40] sm:$0xff]   ;;  %1162 = vmatprep.mubr.bf16.mxu0 %v1226_v4  ;;  %v1229_v11 = vld [vmem:[%s1292_s24 + $0x48] sm:$0xff]   ;;  %v1231_v13 = vld [vmem:[%s1292_s24 + $0x50] sm:$0xff]   ;;  %s1373_s15 = scalar_lea.vmem %s1439_s3, %s1030_s11 }
  0x10   : > { %1178 = vmatprep.mubr.bf16.mxu1 %v1227_v5  ;;  %v1232_v14 = vld [vmem:[%s1292_s24 + $0x18] sm:$0xff]   ;;  %v1234_v16 = vld [vmem:[%s1292_s24 + $0x20] sm:$0xff]   ;;  %v1236_v18 = vld [vmem:[%s1292_s24 + $0x28] sm:$0xff]  }
  0x11   : > { %1149 = vmatpush3.bf16.msra.mxu0 %v1219_v1  ;;  %1203 = vmatpush3.bf16.msra.mxu1 %v1219_v1  ;;  %v1233_v15 = vld [vmem:[%s1292_s24 + $0x58] sm:$0xff]   ;;  %v1235_v17 = vld [vmem:[%s1292_s24 + $0x60] sm:$0xff]   ;;  %v1237_v19 = vld [vmem:[%s1292_s24 + $0x68] sm:$0xff]  }
  0x12   : > { %1150 = vmatprep.subr.bf16.mxu0 %v1220_v2  ;;  %1196 = vmatprep.subr.bf16.mxu1 %v1220_v2  ;;  %v1238_v20 = vld [vmem:[%s1292_s24 + $0x30] sm:$0xff]   ;;  %v1240_v22 = vld [vmem:[%s1292_s24 + $0x38] sm:$0xff]   ;;  %v1328_v24 = vld [vmem:[%s1438_s2] ss:$0 sm:$0xff] }
  0x13   : > { %v1239_v21 = vld [vmem:[%s1292_s24 + $0x70] sm:$0xff]   ;;  %v1241_v23 = vld [vmem:[%s1292_s24 + $0x78] sm:$0xff]  }
  0x15   : > { %1151 = vmatpush3.bf16.msra.mxu0 %v1220_v2  ;;  %1204 = vmatpush3.bf16.msra.mxu1 %v1220_v2 }
  0x16   : > { %1152 = vmatprep.subr.bf16.mxu0 %v1221_v3  ;;  %1197 = vmatprep.subr.bf16.mxu1 %v1221_v3 }
  0x19   : > { %1153 = vmatpush3.bf16.msra.mxu0 %v1221_v3  ;;  %1205 = vmatpush3.bf16.msra.mxu1 %v1221_v3 }
  0x1a   : > { %1154 = vmatprep.subr.bf16.mxu0 %v1222_v6  ;;  %1198 = vmatprep.subr.bf16.mxu1 %v1222_v6 }
  0x1d   : > { %1155 = vmatpush3.bf16.msra.mxu0 %v1222_v6  ;;  %1206 = vmatpush3.bf16.msra.mxu1 %v1222_v6 }
  0x1e   : > { %1156 = vmatprep.subr.bf16.mxu0 %v1223_v7  ;;  %1199 = vmatprep.subr.bf16.mxu1 %v1223_v7 }
  0x21   : > { %1157 = vmatpush3.bf16.msra.mxu0 %v1223_v7  ;;  %1207 = vmatpush3.bf16.msra.mxu1 %v1223_v7 }
  0x22   : > { %1158 = vmatprep.subr.bf16.mxu0 %v1224_v8  ;;  %1200 = vmatprep.subr.bf16.mxu1 %v1224_v8 }
  0x25   : > { %1159 = vmatpush3.bf16.msra.mxu0 %v1224_v8  ;;  %1208 = vmatpush3.bf16.msra.mxu1 %v1224_v8 }
  0x26   : > { %1160 = vmatprep.subr.bf16.mxu0 %v1225_v9  ;;  %1201 = vmatprep.subr.bf16.mxu1 %v1225_v9 }
  0x29   : > { %1161 = vmatpush3.bf16.msra.mxu0 %v1225_v9  ;;  %1209 = vmatpush3.bf16.msra.mxu1 %v1225_v9 }
  0x2c   : > { %1163 = vmatmul.mubr.bf16.vlgmr.msra.gmra.mxu0 %v1228_v10  ;;  %1179 = vmatmul.mubr.bf16.vlgmr.msra.gmra.mxu1 %v1229_v11 }
  0x2d   : > { %1166 = vmatprep.mubr.bf16.mxu0 %v1230_v12  ;;  %1182 = vmatprep.mubr.bf16.mxu1 %v1231_v13 }
  0x34   : > { %1167 = vmatmul.mubr.bf16.gmra.mxu0 %v1232_v14  ;;  %1183 = vmatmul.mubr.bf16.gmra.mxu1 %v1233_v15 }
  0x35   : > { %1170 = vmatprep.mubr.bf16.mxu0 %v1234_v16  ;;  %1186 = vmatprep.mubr.bf16.mxu1 %v1235_v17 }
  0x3c   : > { %1171 = vmatmul.mubr.bf16.gmra.mxu0 %v1236_v18  ;;  %1187 = vmatmul.mubr.bf16.gmra.mxu1 %v1237_v19 }
  0x3d   : > { %1174 = vmatprep.mubr.bf16.mxu0 %v1238_v20  ;;  %1190 = vmatprep.mubr.bf16.mxu1 %v1239_v21 }
  0x44   : > { %1175 = vmatmul.mubr.bf16.gmra.mxu0 %v1240_v22  ;;  %1191 = vmatmul.mubr.bf16.gmra.mxu1 %v1241_v23 }
  0xec   : > { %v1164_v25 = vpop.f32.mrf.mxu0  ;;  %v1180_v26 = vpop.f32.mrf.mxu1 }
  0xed   : > { %v417_v27 = vadd.f32 %v1164_v25, %v1328_v24  ;;  %v481_v30 = vadd.f32 %v1180_v26, %v1328_v24 }
  0xee   : > { %v408_v28 = vpop.f32.mrf.mxu0  ;;  %v472_v29 = vpop.f32.mrf.mxu1 }
  0xef   : > { %v409_v31 = vadd.f32 %v1328_v24, %v408_v28  ;;  %v537_v35 = vmax.f32 %v417_v27, 0.0  ;;  %v553_v37 = vmax.f32 %v481_v30, 0.0  ;;  %v473_v38 = vadd.f32 %v1328_v24, %v472_v29 }
  0xf0   : > { %v1165_v32 = vpop.f32.mrf.mxu0  ;;  %v1181_v33 = vpop.f32.mrf.mxu1 }
  0xf1   : > { %v535_v34 = vmax.f32 %v409_v31, 0.0  ;;  %v420_v39 = vadd.f32 %v1165_v32, %v1328_v24  ;;  %v579_v43 = vrot.slane %v537_v35, 4  ;;  %v675_v45 = vrot.slane %v553_v37, 4 }
  0xf2   : > { %v411_v36 = vpop.f32.mrf.mxu0  ;;  %v475_v41 = vpop.f32.mrf.mxu1  ;;  %v551_v47 = vmax.f32 %v473_v38, 0.0  ;;  %v484_v52 = vadd.f32 %v1181_v33, %v1328_v24 }
  0xf3   : > { %v412_v40 = vadd.f32 %v1328_v24, %v411_v36  ;;  %v567_v42 = vrot.slane %v535_v34, 4  ;;  %v476_v46 = vadd.f32 %v1328_v24, %v475_v41  ;;  %v538_v48 = vmax.f32 %v420_v39, 0.0 }
  0xf4   : > { %v580_v51 = vmax.f32 %v537_v35, %v579_v43  ;;  %v676_v54 = vmax.f32 %v553_v37, %v675_v45  ;;  %v1168_v56 = vpop.f32.mrf.mxu0  ;;  %v663_v57 = vrot.slane %v551_v47, 4  ;;  %v554_v62 = vmax.f32 %v484_v52, 0.0  ;;  %v1184_v9 = vpop.f32.mrf.mxu1 }
  0xf5   : > { %v536_v44 = vmax.f32 %v412_v40, 0.0  ;;  %v568_v50 = vmax.f32 %v535_v34, %v567_v42  ;;  %v552_v55 = vmax.f32 %v476_v46, 0.0  ;;  %v585_v58 = vrot.slane %v538_v48, 4 }
  0xf6   : > { %v581_v61 = vrot.slane %v580_v51, 2  ;;  %v677_v63 = vrot.slane %v676_v54, 2  ;;  %v424_v1 = vpop.f32.mrf.mxu0  ;;  %v664_v2 = vmax.f32 %v551_v47, %v663_v57  ;;  %v433_v6 = vadd.f32 %v1168_v56, %v1328_v24  ;;  %v488_v30 = vpop.f32.mrf.mxu1 }
  0xf7   : > { %v573_v49 = vrot.slane %v536_v44, 4  ;;  %v569_v60 = vrot.slane %v568_v50, 2  ;;  %v669_v0 = vrot.slane %v552_v55, 4  ;;  %v586_v3 = vmax.f32 %v538_v48, %v585_v58 }
  0xf8   : > { %v582_v7 = vmax.f32 %v580_v51, %v581_v61  ;;  %v681_v8 = vrot.slane %v554_v62, 4  ;;  %v678_v10 = vmax.f32 %v676_v54, %v677_v63  ;;  %v541_v12 = vmax.f32 %v433_v6, 0.0  ;;  %v1169_v14 = vpop.f32.mrf.mxu0  ;;  %v1185_v46 = vpop.f32.mrf.mxu1 }
  0xf9   : > { %v574_v53 = vmax.f32 %v536_v44, %v573_v49  ;;  %v570_v5 = vmax.f32 %v568_v50, %v569_v60  ;;  %v670_v11 = vmax.f32 %v552_v55, %v669_v0  ;;  %v425_v13 = vadd.f32 %v1328_v24, %v424_v1 }
  0xfa   : > { %v665_v15 = vrot.slane %v664_v2, 2  ;;  %v587_v16 = vrot.slane %v586_v3, 2  ;;  %v603_v19 = vrot.slane %v541_v12, 4  ;;  %v497_v20 = vadd.f32 %v1184_v9, %v1328_v24  ;;  %v427_v37 = vpop.f32.mrf.mxu0  ;;  %v491_v63 = vpop.f32.mrf.mxu1 }
  0xfb   : > { %v575_v59 = vrot.slane %v574_v53, 2  ;;  %v571_v18 = vrot.slane %v570_v5, 1  ;;  %v539_v21 = vmax.f32 %v425_v13, 0.0  ;;  %v583_v22 = vrot.slane %v582_v7, 1 }
  0xfc   : > { %v682_v23 = vmax.f32 %v554_v62, %v681_v8  ;;  %v436_v25 = vadd.f32 %v1169_v14, %v1328_v24  ;;  %v679_v26 = vrot.slane %v678_v10, 1  ;;  %v671_v27 = vrot.slane %v670_v11, 2 }
  0xfd   : > { %v576_v4 = vmax.f32 %v574_v53, %v575_v59  ;;  %v604_v28 = vmax.f32 %v541_v12, %v603_v19  ;;  %v591_v29 = vrot.slane %v539_v21, 4  ;;  %v666_v31 = vmax.f32 %v664_v2, %v665_v15 }
  0xfe   : > { %v542_v33 = vmax.f32 %v436_v25, 0.0  ;;  %v572_v34 = vmax.f32 %v570_v5, %v571_v18  ;;  %v588_v35 = vmax.f32 %v586_v3, %v587_v16  ;;  %v557_v36 = vmax.f32 %v497_v20, 0.0  ;;  %v1172_v25 = vpop.f32.mrf.mxu0 }
  0xff   : > { %v577_v17 = vrot.slane %v576_v4, 1  ;;  %v584_v38 = vmax.f32 %v582_v7, %v583_v22  ;;  %v683_v39 = vrot.slane %v682_v23, 2  ;;  %v592_v40 = vmax.f32 %v539_v21, %v591_v29 }
 0x100   : > { %v489_v41 = vadd.f32 %v1328_v24, %v488_v30  ;;  %v680_v42 = vmax.f32 %v678_v10, %v679_v26  ;;  %v672_v43 = vmax.f32 %v670_v11, %v671_v27  ;;  %v605_v44 = vrot.slane %v604_v28, 2  ;;  %v1188_v26 = vpop.f32.mrf.mxu1 }
 0x101   : > { %v578_v32 = vmax.f32 %v576_v4, %v577_v17  ;;  %v609_v45 = vrot.slane %v542_v33, 4  ;;  %v667_v47 = vrot.slane %v666_v31, 1  ;;  %v593_v49 = vrot.slane %v592_v40, 2 }
 0x102   : > { %v428_v50 = vadd.f32 %v1328_v24, %v427_v37  ;;  %v1090_v51 = vpack.c.bf16 %v572_v34, %v572_v34  ;;  %v589_v52 = vrot.slane %v588_v35, 1  ;;  %v699_v53 = vrot.slane %v557_v36, 4 }
 0x103   : > { %v1091_v48 = vpack.c.bf16 %v578_v32, %v578_v32  ;;  %v610_v54 = vmax.f32 %v542_v33, %v609_v45  ;;  %v684_v55 = vmax.f32 %v682_v23, %v683_v39  ;;  %v594_v56 = vmax.f32 %v592_v40, %v593_v49 }
 0x104   : > { %v555_v57 = vmax.f32 %v489_v41, 0.0  ;;  %v540_v58 = vmax.f32 %v428_v50, 0.0  ;;  %v1092_v59 = vpack.c.bf16 %v584_v38, %v584_v38  ;;  %v673_v60 = vrot.slane %v672_v43, 1 }
 0x105   : > { %v606_v61 = vmax.f32 %v604_v28, %v605_v44  ;;  %v611_v62 = vrot.slane %v610_v54, 2  ;;  %v1108_v0 = vpack.c.bf16 %v680_v42, %v680_v42  ;;  %v888_v1 = vunpack.c.l.b16 %v1091_v48  ;;  %v504_v48 = vpop.f32.mrf.mxu1 }
 0x106   : > { %v595_v2 = vrot.slane %v594_v56, 1  ;;  %v597_v3 = vrot.slane %v540_v58, 4  ;;  %v887_v4 = vunpack.c.l.b16 %v1090_v51  ;;  %v590_v5 = vmax.f32 %v588_v35, %v589_v52 }
 0x107   : > { %v700_v6 = vmax.f32 %v557_v36, %v699_v53  ;;  %v612_v7 = vmax.f32 %v610_v54, %v611_v62  ;;  %v687_v8 = vrot.slane %v555_v57, 4  ;;  %v500_v9 = vadd.f32 %v1185_v46, %v1328_v24 }
 0x108   : > { %v598_v10 = vmax.f32 %v540_v58, %v597_v3  ;;  %v492_v11 = vadd.f32 %v1328_v24, %v491_v63  ;;  %v668_v12 = vmax.f32 %v666_v31, %v667_v47  ;;  %v674_v13 = vmax.f32 %v672_v43, %v673_v60  ;;  %v440_v47 = vpop.f32.mrf.mxu0 }
 0x109   : > { %v607_v14 = vrot.slane %v606_v61, 1  ;;  %v596_v15 = vmax.f32 %v594_v56, %v595_v2  ;;  %v685_v16 = vrot.slane %v684_v55, 1  ;;  %v920_v17 = vsel %vm919_vm0, %v888_v1, %v887_v4  ;;  %v1189_v2 = vpop.f32.mrf.mxu1 }
 0x10a   : > { %v613_v18 = vrot.slane %v612_v7, 1  ;;  %v599_v19 = vrot.slane %v598_v10, 2  ;;  %v889_v20 = vunpack.c.l.b16 %v1092_v59  ;;  %v1351_v21 = vunpack.c.l.b16 %v1108_v0  ;;  %v1173_v1 = vpop.f32.mrf.mxu0 }
 0x10b   : > { %v1093_v22 = vpack.c.bf16 %v590_v5, %v590_v5  ;;  %v701_v23 = vrot.slane %v700_v6, 2  ;;  %v688_v27 = vmax.f32 %v555_v57, %v687_v8  ;;  %v558_v28 = vmax.f32 %v500_v9, 0.0 }
 0x10c   : > { %v600_v29 = vmax.f32 %v598_v10, %v599_v19  ;;  %v556_v30 = vmax.f32 %v492_v11, 0.0  ;;  %v922_v31 = vsel %vm921_vm1, %v889_v20, %v920_v17  ;;  %v1107_v32 = vpack.c.bf16 %v674_v13, %v674_v13  ;;  %v443_v19 = vpop.f32.mrf.mxu0  ;;  %v507_v20 = vpop.f32.mrf.mxu1 }
 0x10d   : > { %v608_v33 = vmax.f32 %v606_v61, %v607_v14  ;;  %v1094_v34 = vpack.c.bf16 %v596_v15, %v596_v15  ;;  %v614_v35 = vmax.f32 %v612_v7, %v613_v18  ;;  %v449_v37 = vadd.f32 %v1172_v25, %v1328_v24 }
 0x10e   : > { %v601_v36 = vrot.slane %v600_v29, 1  ;;  %v513_v38 = vadd.f32 %v1188_v26, %v1328_v24  ;;  %v1106_v39 = vpack.c.bf16 %v668_v12, %v668_v12  ;;  %v890_v40 = vunpack.c.l.b16 %v1093_v22 }
 0x10f   : > { %v686_v41 = vmax.f32 %v684_v55, %v685_v16  ;;  %v702_v42 = vmax.f32 %v700_v6, %v701_v23  ;;  %v689_v43 = vrot.slane %v688_v27, 2  ;;  %v705_v44 = vrot.slane %v558_v28, 4 }
 0x110   : > { %v602_v45 = vmax.f32 %v600_v29, %v601_v36  ;;  %v693_v46 = vrot.slane %v556_v30, 4  ;;  %v904_v49 = vunpack.c.l.b16 %v1107_v32  ;;  %v1096_v50 = vpack.c.bf16 %v608_v33, %v608_v33 }
 0x111   : > { %v891_v51 = vunpack.c.l.b16 %v1094_v34  ;;  %v924_v52 = vsel %vm923_vm2, %v890_v40, %v922_v31  ;;  %v1097_v53 = vpack.c.bf16 %v614_v35, %v614_v35  ;;  %v545_v56 = vmax.f32 %v449_v37, 0.0  ;;  %v1176_v40 = vpop.f32.mrf.mxu0 }
 0x112   : > { %v1095_v54 = vpack.c.bf16 %v602_v45, %v602_v45  ;;  %v561_v55 = vmax.f32 %v513_v38, 0.0  ;;  %v903_v57 = vunpack.c.l.b16 %v1106_v39  ;;  %v703_v58 = vrot.slane %v702_v42, 1 }
 0x113   : > { %v441_v59 = vadd.f32 %v1328_v24, %v440_v47  ;;  %v505_v60 = vadd.f32 %v1328_v24, %v504_v48  ;;  %v690_v61 = vmax.f32 %v688_v27, %v689_v43  ;;  %v706_v62 = vmax.f32 %v558_v28, %v705_v44 }
 0x114   : > { %v892_v63 = vunpack.c.l.b16 %v1095_v54  ;;  %v694_v0 = vmax.f32 %v556_v30, %v693_v46  ;;  %v1109_v3 = vpack.c.bf16 %v686_v41, %v686_v41  ;;  %v940_v4 = vsel %vm919_vm0, %v904_v49, %v903_v57  ;;  %v1192_v41 = vpop.f32.mrf.mxu1 }
 0x115   : > { %v893_v5 = vunpack.c.l.b16 %v1096_v50  ;;  %v926_v6 = vsel %vm925_vm3, %v891_v51, %v924_v52  ;;  %v894_v7 = vunpack.c.l.b16 %v1097_v53  ;;  %v627_v9 = vrot.slane %v545_v56, 4 }
 0x116   : > { %v928_v8 = vsel %vm927_vm4, %v892_v63, %v926_v6  ;;  %v723_v10 = vrot.slane %v561_v55, 4  ;;  %v704_v11 = vmax.f32 %v702_v42, %v703_v58  ;;  %v543_v13 = vmax.f32 %v441_v59, 0.0  ;;  %v456_v58 = vpop.f32.mrf.mxu0  ;;  %v520_v59 = vpop.f32.mrf.mxu1 }
 0x117   : > { %v930_v12 = vsel %vm929_vm5, %v893_v5, %v928_v8  ;;  %v559_v14 = vmax.f32 %v505_v60, 0.0  ;;  %v691_v15 = vrot.slane %v690_v61, 1  ;;  %v707_v16 = vrot.slane %v706_v62, 2 }
 0x118   : > { %v932_v17 = vsel %vm931_vm6, %v894_v7, %v930_v12  ;;  %v695_v18 = vrot.slane %v694_v0, 2  ;;  %v906_v22 = vunpack.c.l.b16 %v1109_v3  ;;  %v941_v23 = vsel %vm921_vm1, %v1351_v21, %v940_v4  ;;  %v1177_v12 = vpop.f32.mrf.mxu0 }
 0x119   : > { %v954_v25 = vpack.c.b16 %v932_v17, %v932_v17  ;;  %v628_v26 = vmax.f32 %v545_v56, %v627_v9  ;;  %v724_v27 = vmax.f32 %v561_v55, %v723_v10  ;;  %v452_v28 = vadd.f32 %v1173_v1, %v1328_v24 }
 0x11a   : > { %v516_v29 = vadd.f32 %v1189_v2, %v1328_v24  ;;  %v615_v30 = vrot.slane %v543_v13, 4  ;;  %v711_v31 = vrot.slane %v559_v14, 4  ;;  %v444_v32 = vadd.f32 %v1328_v24, %v443_v19 }
 0x11b   : > { %962 = vst [vmem:[%s1373_s15] sm:$0xf] %v954_v25  ;;  %v508_v33 = vadd.f32 %v1328_v24, %v507_v20  ;;  %v1112_v34 = vpack.c.bf16 %v704_v11, %v704_v11  ;;  %v1383_v35 = vmax.f32 %v690_v61, %v691_v15  ;;  %v708_v36 = vmax.f32 %v706_v62, %v707_v16 }
 0x11c   : > { %v696_v37 = vmax.f32 %v694_v0, %v695_v18  ;;  %v1386_v21 = vsel %vm923_vm2, %v906_v22, %v941_v23  ;;  %v544_v38 = vmax.f32 %v444_v32, 0.0  ;;  %v629_v42 = vrot.slane %v628_v26, 2 }
 0x11d   : > { %v560_v39 = vmax.f32 %v508_v33, 0.0  ;;  %v725_v43 = vrot.slane %v724_v27, 2  ;;  %v546_v44 = vmax.f32 %v452_v28, 0.0  ;;  %v562_v45 = vmax.f32 %v516_v29, 0.0 }
 0x11e   : > { %v616_v46 = vmax.f32 %v543_v13, %v615_v30  ;;  %v712_v47 = vmax.f32 %v559_v14, %v711_v31  ;;  %v621_v48 = vrot.slane %v544_v38, 4  ;;  %v1388_v50 = vunpack.c.l.b16 %v1112_v34  ;;  %v1193_v13 = vpop.f32.mrf.mxu1 }
 0x11f   : > { %v717_v49 = vrot.slane %v560_v39, 4  ;;  %v1110_v51 = vpack.c.bf16 %v1383_v35, %v1383_v35  ;;  %v709_v52 = vrot.slane %v708_v36, 1  ;;  %v697_v53 = vrot.slane %v696_v37, 1 }
 0x120   : > { %v622_v54 = vmax.f32 %v544_v38, %v621_v48  ;;  %v465_v55 = vadd.f32 %v1176_v40, %v1328_v24  ;;  %v529_v57 = vadd.f32 %v1192_v41, %v1328_v24  ;;  %v630_v60 = vmax.f32 %v628_v26, %v629_v42 }
 0x121   : > { %v718_v56 = vmax.f32 %v560_v39, %v717_v49  ;;  %v726_v61 = vmax.f32 %v724_v27, %v725_v43  ;;  %v633_v62 = vrot.slane %v546_v44, 4  ;;  %v729_v63 = vrot.slane %v562_v45, 4 }
 0x122   : > { %v617_v0 = vrot.slane %v616_v46, 2  ;;  %v713_v1 = vrot.slane %v712_v47, 2  ;;  %v623_v2 = vrot.slane %v622_v54, 2  ;;  %v1394_v4 = vmax.f32 %v708_v36, %v709_v52 }
 0x123   : > { %v719_v3 = vrot.slane %v718_v56, 2  ;;  %v698_v5 = vmax.f32 %v696_v37, %v697_v53  ;;  %v457_v6 = vadd.f32 %v1328_v24, %v456_v58  ;;  %v521_v7 = vadd.f32 %v1328_v24, %v520_v59 }
 0x124   : > { %v624_v8 = vmax.f32 %v622_v54, %v623_v2  ;;  %v549_v10 = vmax.f32 %v465_v55, 0.0  ;;  %v565_v11 = vmax.f32 %v529_v57, 0.0  ;;  %v631_v14 = vrot.slane %v630_v60, 1 }
 0x125   : > { %v720_v9 = vmax.f32 %v718_v56, %v719_v3  ;;  %v727_v15 = vrot.slane %v726_v61, 1  ;;  %v547_v16 = vmax.f32 %v457_v6, 0.0  ;;  %v563_v17 = vmax.f32 %v521_v7, 0.0 }
 0x126   : > { %v618_v18 = vmax.f32 %v616_v46, %v617_v0  ;;  %v714_v19 = vmax.f32 %v712_v47, %v713_v1  ;;  %v634_v20 = vmax.f32 %v546_v44, %v633_v62  ;;  %v730_v22 = vmax.f32 %v562_v45, %v729_v63 }
 0x127   : > { %v639_v23 = vrot.slane %v547_v16, 4  ;;  %v735_v25 = vrot.slane %v563_v17, 4  ;;  %v468_v26 = vadd.f32 %v1177_v12, %v1328_v24  ;;  %v532_v27 = vadd.f32 %v1193_v13, %v1328_v24 }
 0x128   : > { %v625_v28 = vrot.slane %v624_v8, 1  ;;  %v721_v29 = vrot.slane %v720_v9, 1  ;;  %v651_v30 = vrot.slane %v549_v10, 4  ;;  %v747_v31 = vrot.slane %v565_v11, 4 }
 0x129   : > { %v640_v32 = vmax.f32 %v547_v16, %v639_v23  ;;  %v736_v33 = vmax.f32 %v563_v17, %v735_v25  ;;  %v550_v34 = vmax.f32 %v468_v26, 0.0  ;;  %v566_v35 = vmax.f32 %v532_v27, 0.0 }
 0x12a   : > { %v907_v36 = vunpack.c.l.b16 %v1110_v51  ;;  %v1111_v37 = vpack.c.bf16 %v698_v5, %v698_v5  ;;  %v619_v38 = vrot.slane %v618_v18, 1  ;;  %v715_v39 = vrot.slane %v714_v19, 1 }
 0x12b   : > { %v635_v40 = vrot.slane %v634_v20, 2  ;;  %v731_v41 = vrot.slane %v730_v22, 2  ;;  %v657_v42 = vrot.slane %v550_v34, 4  ;;  %v753_v43 = vrot.slane %v566_v35, 4 }
 0x12c   : > { %v632_v44 = vmax.f32 %v630_v60, %v631_v14  ;;  %v728_v45 = vmax.f32 %v726_v61, %v727_v15  ;;  %v652_v46 = vmax.f32 %v549_v10, %v651_v30  ;;  %v748_v47 = vmax.f32 %v565_v11, %v747_v31  ;;  %v459_v60 = vpop.f32.mrf.mxu0  ;;  %v523_v61 = vpop.f32.mrf.mxu1 }
 0x12d   : > { %v626_v48 = vmax.f32 %v624_v8, %v625_v28  ;;  %v722_v49 = vmax.f32 %v720_v9, %v721_v29  ;;  %v641_v52 = vrot.slane %v640_v32, 2  ;;  %v737_v53 = vrot.slane %v736_v33, 2 }
 0x12e   : > { %v1402_v54 = vsel %vm925_vm3, %v907_v36, %v1386_v21  ;;  %v1404_v51 = vunpack.c.l.b16 %v1111_v37  ;;  %v658_v56 = vmax.f32 %v550_v34, %v657_v42  ;;  %v754_v55 = vmax.f32 %v566_v35, %v753_v43 }
 0x12f   : > { %v620_v57 = vmax.f32 %v618_v18, %v619_v38  ;;  %v716_v58 = vmax.f32 %v714_v19, %v715_v39  ;;  %v636_v59 = vmax.f32 %v634_v20, %v635_v40  ;;  %v732_v62 = vmax.f32 %v730_v22, %v731_v41 }
 0x130   : > { %v1100_v63 = vpack.c.bf16 %v632_v44, %v632_v44  ;;  %v1116_v0 = vpack.c.bf16 %v728_v45, %v728_v45  ;;  %v653_v1 = vrot.slane %v652_v46, 2  ;;  %v749_v2 = vrot.slane %v748_v47, 2 }
 0x131   : > { %v1099_v3 = vpack.c.bf16 %v626_v48, %v626_v48  ;;  %v1115_v5 = vpack.c.bf16 %v722_v49, %v722_v49  ;;  %v642_v6 = vmax.f32 %v640_v32, %v641_v52  ;;  %v738_v7 = vmax.f32 %v736_v33, %v737_v53 }
 0x132   : > { %v659_v21 = vrot.slane %v658_v56, 2  ;;  %v755_v8 = vrot.slane %v754_v55, 2  ;;  %v460_v9 = vadd.f32 %v1328_v24, %v459_v60  ;;  %v524_v10 = vadd.f32 %v1328_v24, %v523_v61 }
 0x133   : > { %v1098_v11 = vpack.c.bf16 %v620_v57, %v620_v57  ;;  %v1114_v12 = vpack.c.bf16 %v716_v58, %v716_v58  ;;  %v637_v13 = vrot.slane %v636_v59, 1  ;;  %v733_v14 = vrot.slane %v732_v62, 1 }
 0x134   : > { %v654_v15 = vmax.f32 %v652_v46, %v653_v1  ;;  %v750_v16 = vmax.f32 %v748_v47, %v749_v2  ;;  %v548_v17 = vmax.f32 %v460_v9, 0.0  ;;  %v564_v18 = vmax.f32 %v524_v10, 0.0 }
 0x135   : > { %v896_v19 = vunpack.c.l.b16 %v1099_v3  ;;  %v912_v20 = vunpack.c.l.b16 %v1115_v5  ;;  %v643_v22 = vrot.slane %v642_v6, 1  ;;  %v739_v23 = vrot.slane %v738_v7, 1 }
 0x136   : > { %v660_v25 = vmax.f32 %v658_v56, %v659_v21  ;;  %v756_v26 = vmax.f32 %v754_v55, %v755_v8  ;;  %v645_v27 = vrot.slane %v548_v17, 4  ;;  %v741_v28 = vrot.slane %v564_v18, 4 }
 0x137   : > { %v895_v29 = vunpack.c.l.b16 %v1098_v11  ;;  %v911_v30 = vunpack.c.l.b16 %v1114_v12  ;;  %v638_v31 = vmax.f32 %v636_v59, %v637_v13  ;;  %v734_v24 = vmax.f32 %v732_v62, %v733_v14 }
 0x138   : > { %v655_v32 = vrot.slane %v654_v15, 1  ;;  %v751_v33 = vrot.slane %v750_v16, 1  ;;  %v646_v34 = vmax.f32 %v548_v17, %v645_v27  ;;  %v742_v35 = vmax.f32 %v564_v18, %v741_v28 }
 0x139   : > { %v933_v36 = vsel %vm919_vm0, %v896_v19, %v895_v29  ;;  %v947_v37 = vsel %vm919_vm0, %v912_v20, %v911_v30  ;;  %v644_v38 = vmax.f32 %v642_v6, %v643_v22  ;;  %v740_v39 = vmax.f32 %v738_v7, %v739_v23 }
 0x13a   : > { %v661_v40 = vrot.slane %v660_v25, 1  ;;  %v757_v41 = vrot.slane %v756_v26, 1  ;;  %v647_v42 = vrot.slane %v646_v34, 2  ;;  %v743_v43 = vrot.slane %v742_v35, 2 }
 0x13b   : > { %v897_v44 = vunpack.c.l.b16 %v1100_v63  ;;  %v913_v45 = vunpack.c.l.b16 %v1116_v0  ;;  %v1101_v46 = vpack.c.bf16 %v638_v31, %v638_v31  ;;  %v1117_v47 = vpack.c.bf16 %v734_v24, %v734_v24 }
 0x13c   : > { %v656_v48 = vmax.f32 %v654_v15, %v655_v32  ;;  %v752_v49 = vmax.f32 %v750_v16, %v751_v33  ;;  %v648_v52 = vmax.f32 %v646_v34, %v647_v42  ;;  %v744_v53 = vmax.f32 %v742_v35, %v743_v43 }
 0x13d   : > { %v934_v56 = vsel %vm921_vm1, %v897_v44, %v933_v36  ;;  %v948_v55 = vsel %vm921_vm1, %v913_v45, %v947_v37  ;;  %v1102_v57 = vpack.c.bf16 %v644_v38, %v644_v38  ;;  %v1118_v58 = vpack.c.bf16 %v740_v39, %v740_v39 }
 0x13e   : > { %v662_v59 = vmax.f32 %v660_v25, %v661_v40  ;;  %v758_v62 = vmax.f32 %v756_v26, %v757_v41  ;;  %v649_v60 = vrot.slane %v648_v52, 1  ;;  %v745_v61 = vrot.slane %v744_v53, 1 }
 0x13f   : > { %v1113_v63 = vpack.c.bf16 %v1394_v4, %v1394_v4  ;;  %v944_v0 = vsel %vm927_vm4, %v1404_v51, %v1402_v54  ;;  %v898_v1 = vunpack.c.l.b16 %v1101_v46  ;;  %v914_v2 = vunpack.c.l.b16 %v1117_v47 }
 0x140   : > { %v1104_v3 = vpack.c.bf16 %v656_v48, %v656_v48  ;;  %v1120_v5 = vpack.c.bf16 %v752_v49, %v752_v49  ;;  %v650_v6 = vmax.f32 %v648_v52, %v649_v60  ;;  %v746_v7 = vmax.f32 %v744_v53, %v745_v61 }
 0x141   : > { %v899_v21 = vunpack.c.l.b16 %v1102_v57  ;;  %v935_v8 = vsel %vm923_vm2, %v898_v1, %v934_v56  ;;  %v915_v9 = vunpack.c.l.b16 %v1118_v58  ;;  %v949_v10 = vsel %vm923_vm2, %v914_v2, %v948_v55 }
 0x142   : > { %v1105_v11 = vpack.c.bf16 %v662_v59, %v662_v59  ;;  %v1121_v12 = vpack.c.bf16 %v758_v62, %v758_v62  ;;  %v1103_v13 = vpack.c.bf16 %v650_v6, %v650_v6  ;;  %v1119_v4 = vpack.c.bf16 %v746_v7, %v746_v7 }
 0x143   : > { %v910_v14 = vunpack.c.l.b16 %v1113_v63  ;;  %v945_v54 = vsel %vm929_vm5, %v1388_v50, %v944_v0  ;;  %v901_v16 = vunpack.c.l.b16 %v1104_v3  ;;  %v917_v17 = vunpack.c.l.b16 %v1120_v5 }
 0x144   : > { %v900_v51 = vunpack.c.l.b16 %v1103_v13  ;;  %v916_v15 = vunpack.c.l.b16 %v1119_v4  ;;  %v936_v18 = vsel %vm925_vm3, %v899_v21, %v935_v8  ;;  %v950_v19 = vsel %vm925_vm3, %v915_v9, %v949_v10 }
 0x145   : > { %v902_v20 = vunpack.c.l.b16 %v1105_v11  ;;  %v918_v22 = vunpack.c.l.b16 %v1121_v12  ;;  %v946_v26 = vsel %vm931_vm6, %v910_v14, %v945_v54 }
 0x146   : > { %v937_v23 = vsel %vm927_vm4, %v900_v51, %v936_v18  ;;  %v951_v25 = vsel %vm927_vm4, %v916_v15, %v950_v19  ;;  %v956_v31 = vpack.c.b16 %v946_v26, %v946_v26 }
 0x147   : > { %v938_v50 = vsel %vm929_vm5, %v901_v16, %v937_v23  ;;  %v952_v27 = vsel %vm929_vm5, %v917_v17, %v951_v25 }
 0x148   : > { %v939_v28 = vsel %vm931_vm6, %v902_v20, %v938_v50  ;;  %v953_v29 = vsel %vm931_vm6, %v918_v22, %v952_v27  ;;  %964 = vst [vmem:[%s1373_s15 + $0x8] sm:$0xf] %v956_v31 }
 0x149   : > { %v955_v30 = vpack.c.b16 %v939_v28, %v939_v28  ;;  %v957_v24 = vpack.c.b16 %v953_v29, %v953_v29 }
 0x14b   : > { %963 = vst [vmem:[%s1373_s15 + $0x4] sm:$0xf] %v955_v30  ;;  %965 = vst [vmem:[%s1373_s15 + $0xc] sm:$0xf] %v957_v24 }
 0x14c PF: > { %s13_s12 = sadd.s32 1, %s1248_s12  }
 0x14d   : > { %p10_p5 = scmp.ge.s32.totalorder %s13_s12, 4  }
 0x14f   :  { %12 = sbr.rel (!%p10_p5) target bundleno = 1 (0x1), region = 62 }

// kernel: videonet_forward.3
= control target key start
LH: loop header
LB: loop body
LE: loop exit
PB: predicated region body
PF: predicated region fallthrough
CT: control target
= control target key end

     0   :  { %s2278_s20 = smov 0   ;;  %s2468_s0 = inlined_call_operand.vmem [shape: bf16[2,4096], index: 0, kind: input, shape index: {}]   ;;  %s2469_s1 = inlined_call_operand.vmem [shape: bf16[4096,128], index: 1, kind: input, shape index: {}]   ;;  %s2470_s2 = inlined_call_operand.vmem [shape: f32[1,128], index: 2, kind: input, shape index: {}]   ;;  %s2471_s3 = inlined_call_operand.vmem [shape: f32[1,128], index: 3, kind: input, shape index: {}]   ;;  %s2472_s4 = inlined_call_operand.<no memory space> [shape: f32[1,1], index: 4, kind: input, shape index: {}]   ;;  %s2473_s5 = inlined_call_operand.vmem [shape: f32[2,1], index: 5, kind: output, shape index: {}]  }
   0x1   :  { %v10_v0 = vstv %s2472_s4 }
   0x2   :  { %11 = vst [vmem:[#allocation3] sm:$0x1] %v10_v0 }
   0x3 LB: > { %s2284_s21 = sadd.s32 4294967295, %s2241_s20   ;;  %p1780_p0 = scmp.ge.s32.totalorder %s2241_s20, 1  ;;  %s2241_s20 = sphi %s2278_s20, %s17_s20  }
   0x4   : > { %p195_p1 = scmp.lt.s32.totalorder %s2241_s20, 3 }
   0x6   : > { %p196_p2 = pnand %p1780_p0, %p195_p1 }
   0x7   : > { %s1781_s4 = sshll.u32 (!%p196_p2), %s2284_s21, 4  ;;  %s1782_s22 = sshll.u32 (!%p196_p2), %s2284_s21, 8 }
   0x8   : > { %199 = sbr.rel (%p196_p2) target bundleno = 511 (0x1ff), region = 40  ;;  %p223_p3 = scmp.lt.s32.totalorder (!%p196_p2), %s1781_s4, 31 }
   0x9   : > { %p228_p4 = scmp.lt.s32.totalorder (!%p196_p2), %s1782_s22, 511  ;;  %p1784_p5 = scmp.ne.s32.totalorder (!%p196_p2), %s2284_s21, 0 }
   0xd   : > { %s2475_s4 = smov (!%p223_p3, %s1781_s4), 31  ;;  %s2477_s22 = smov (!%p228_p4, %s1782_s22), 511 }
   0xe   : > { %s2293_s25 = scalar_lea.vmem %s2468_s0, %s2475_s4  ;;  %s1783_s26 = sshll.u32 %s2477_s22, 2 }
   0xf   : > { %s2298_s29 = scalar_lea.vmem %s2469_s1, %s1783_s26  ;;  %237 = sbr.rel (%p1784_p5) target bundleno = 22 (0x16), region = 44 }
  0x14   : > { %v2243_v1 = vmov 0.0  }
  0x15   : > { %238 = vst [vmem:[#allocation2] sm:$0x3] %v2243_v1 }
  0x16 PF: > { %v2105_v2 = vld [vmem:[%s2298_s29 + $0x78] sm:$0xff]   ;;  %v2109_v6 = vld [vmem:[%s2298_s29 + $0x70] sm:$0xff]   ;;  %v2113_v10 = vld [vmem:[%s2298_s29 + $0x68] sm:$0xff]   ;;  %v504_v30 = vlaneseq  ;;  %v2244_v38 = vmov 1966171168   ;;  %p1913_p6 = scmp.ne.s32.totalorder %s2284_s21, 1 }
  0x17   : > { %v2106_v3 = vld [vmem:[%s2298_s29 + $0xf8] sm:$0xff]   ;;  %1919 = vmatprep.subr.bf16.mxu0 %v2105_v2  ;;  %v2110_v7 = vld [vmem:[%s2298_s29 + $0xf0] sm:$0xff]   ;;  %v2114_v11 = vld [vmem:[%s2298_s29 + $0xe8] sm:$0xff]   ;;  %v502_v39 = vunpack.c.l.s4 %v2244_v38 }
  0x18   : > { %v2107_v4 = vld [vmem:[%s2298_s29 + $0x38] sm:$0xff]   ;;  %1941 = vmatprep.subr.bf16.mxu1 %v2106_v3  ;;  %v2111_v8 = vld [vmem:[%s2298_s29 + $0x30] sm:$0xff]   ;;  %v2115_v12 = vld [vmem:[%s2298_s29 + $0x28] sm:$0xff]   ;;  %v505_v35 = vshrl.u32 %v504_v30, 7 }
  0x19   : > { %v2108_v5 = vld [vmem:[%s2298_s29 + $0xb8] sm:$0xff]   ;;  %1920 = vmatpush3.bf16.msra.mxu0 %v2107_v4  ;;  %v2112_v9 = vld [vmem:[%s2298_s29 + $0xb0] sm:$0xff]   ;;  %v2116_v13 = vld [vmem:[%s2298_s29 + $0xa8] sm:$0xff]   ;;  %v503_v42 = vunpack.c.0.s8 %v502_v39 }
  0x1a   : > { %1942 = vmatpush3.bf16.msra.mxu1 %v2108_v5  ;;  %1921 = vmatprep.subr.bf16.mxu0 %v2109_v6  ;;  %v2117_v14 = vld [vmem:[%s2298_s29 + $0x60] sm:$0xff]   ;;  %v2121_v18 = vld [vmem:[%s2298_s29 + $0x58] sm:$0xff]   ;;  %v2125_v22 = vld [vmem:[%s2298_s29 + $0x50] sm:$0xff]  }
  0x1b   : > { %1943 = vmatprep.subr.bf16.mxu1 %v2110_v7  ;;  %v2118_v15 = vld [vmem:[%s2298_s29 + $0xe0] sm:$0xff]   ;;  %v2122_v19 = vld [vmem:[%s2298_s29 + $0xd8] sm:$0xff]   ;;  %v2126_v23 = vld [vmem:[%s2298_s29 + $0xd0] sm:$0xff]   ;;  %v2336_v43 = vsub.s32 %v503_v42, %v505_v35 }
  0x1c   : > { %v2119_v16 = vld [vmem:[%s2298_s29 + $0x20] sm:$0xff]   ;;  %v2123_v20 = vld [vmem:[%s2298_s29 + $0x18] sm:$0xff]   ;;  %v2127_v24 = vld [vmem:[%s2298_s29 + $0x10] sm:$0xff]  }
  0x1d   : > { %1922 = vmatpush3.bf16.msra.mxu0 %v2111_v8  ;;  %v2120_v17 = vld [vmem:[%s2298_s29 + $0xa0] sm:$0xff]   ;;  %v2124_v21 = vld [vmem:[%s2298_s29 + $0x98] sm:$0xff]   ;;  %v2128_v25 = vld [vmem:[%s2298_s29 + $0x90] sm:$0xff]  }
  0x1e   : > { %1944 = vmatpush3.bf16.msra.mxu1 %v2112_v9  ;;  %1923 = vmatprep.subr.bf16.mxu0 %v2113_v10  ;;  %v2129_v26 = vld [vmem:[%s2298_s29 + $0x48] sm:$0xff]   ;;  %v2133_v31 = vld [vmem:[%s2298_s29 + $0x40] sm:$0xff]   ;;  %v2138_v37 = vld [vmem:[%s2298_s29 + $0x178] sm:$0xff]  }
  0x1f   : > { %1945 = vmatprep.subr.bf16.mxu1 %v2114_v11  ;;  %v2130_v27 = vld [vmem:[%s2298_s29 + $0xc8] sm:$0xff]   ;;  %v2134_v32 = vld [vmem:[%s2298_s29 + $0xc0] sm:$0xff]   ;;  %v2139_v40 = vld [vmem:[%s2298_s29 + $0x1f8] sm:$0xff]  }
  0x20   : > { %v2131_v28 = vld [vmem:[%s2298_s29 + $0x8] sm:$0xff]   ;;  %v2135_v33 = vld [vmem:[%s2298_s29] sm:$0xff]   ;;  %v2140_v50 = vld [vmem:[%s2298_s29 + $0x138] sm:$0xff]  }
  0x21   : > { %1924 = vmatpush3.bf16.msra.mxu0 %v2115_v12  ;;  %v2132_v29 = vld [vmem:[%s2298_s29 + $0x88] sm:$0xff]   ;;  %v2136_v34 = vld [vmem:[%s2298_s29 + $0x80] sm:$0xff]   ;;  %v2142_v53 = vld [vmem:[%s2298_s29 + $0x170] sm:$0xff]  }
  0x22   : > { %1946 = vmatpush3.bf16.msra.mxu1 %v2116_v13  ;;  %1925 = vmatprep.subr.bf16.mxu0 %v2117_v14  ;;  %v240_v36 = vld [vmem:[%s2293_s25] sm:$0xff]  ;;  %v2141_v55 = vld [vmem:[%s2298_s29 + $0x1b8] sm:$0xff]   ;;  %v2143_v56 = vld [vmem:[%s2298_s29 + $0x1f0] sm:$0xff]  }
  0x23   : > { %1947 = vmatprep.subr.bf16.mxu1 %v2118_v15  ;;  %v500_v41 = vcombine.high %v240_v36, %v240_v36  ;;  %v507_v44 = vrot.slane %v240_v36, %v2336_v43  ;;  %v2144_v58 = vld [vmem:[%s2298_s29 + $0x130] sm:$0xff]   ;;  %v2146_v59 = vld [vmem:[%s2298_s29 + $0x168] sm:$0xff]   ;;  %v2150_v63 = vld [vmem:[%s2298_s29 + $0x160] sm:$0xff]  }
  0x24   : > { %v2145_v60 = vld [vmem:[%s2298_s29 + $0x1b0] sm:$0xff]   ;;  %v2147_v61 = vld [vmem:[%s2298_s29 + $0x1e8] sm:$0xff]   ;;  %v2151_v1 = vld [vmem:[%s2298_s29 + $0x1e0] sm:$0xff]  }
  0x25   : > { %1926 = vmatpush3.bf16.msra.mxu0 %v2119_v16  ;;  %v2340_v45 = vrot.slane %v500_v41, %v2336_v43  ;;  %v515_v46 = vcombine.high %v507_v44, %v507_v44  ;;  %v523_v47 = vrot.slane %v507_v44, %v2336_v43  ;;  %v2148_v62 = vld [vmem:[%s2298_s29 + $0x128] sm:$0xff]   ;;  %v2152_v2 = vld [vmem:[%s2298_s29 + $0x120] sm:$0xff]   ;;  %v2154_v3 = vld [vmem:[%s2298_s29 + $0x158] sm:$0xff]  }
  0x26   : > { %1948 = vmatpush3.bf16.msra.mxu1 %v2120_v17  ;;  %1927 = vmatprep.subr.bf16.mxu0 %v2121_v18  ;;  %v2149_v0 = vld [vmem:[%s2298_s29 + $0x1a8] sm:$0xff]   ;;  %v2153_v4 = vld [vmem:[%s2298_s29 + $0x1a0] sm:$0xff]   ;;  %v2155_v5 = vld [vmem:[%s2298_s29 + $0x1d8] sm:$0xff]  }
  0x27   : > { %1949 = vmatprep.subr.bf16.mxu1 %v2122_v19  ;;  %v516_v48 = vcombine.high %v2340_v45, %v2340_v45  ;;  %v537_v49 = vrot.slane %v515_v46, %v2336_v43  ;;  %v545_v52 = vcombine.high %v523_v47, %v523_v47  ;;  %v2156_v6 = vld [vmem:[%s2298_s29 + $0x118] sm:$0xff]   ;;  %v2158_v7 = vld [vmem:[%s2298_s29 + $0x150] sm:$0xff]   ;;  %v2162_v11 = vld [vmem:[%s2298_s29 + $0x148] sm:$0xff]   ;;  %v530_v19 = vrot.slane %v2340_v45, %v2336_v43 }
  0x28   : > { %v2157_v8 = vld [vmem:[%s2298_s29 + $0x198] sm:$0xff]   ;;  %v2159_v9 = vld [vmem:[%s2298_s29 + $0x1d0] sm:$0xff]   ;;  %v2163_v13 = vld [vmem:[%s2298_s29 + $0x1c8] sm:$0xff]  }
  0x29   : > { %1928 = vmatpush3.bf16.msra.mxu0 %v2123_v20  ;;  %v544_v51 = vrot.slane %v516_v48, %v2336_v43  ;;  %1414 = vmatprep.mubr.bf16.mxu0 %v537_v49  ;;  %v547_v54 = vcombine.high %v537_v49, %v537_v49  ;;  %v2160_v10 = vld [vmem:[%s2298_s29 + $0x110] sm:$0xff]   ;;  %v2164_v14 = vld [vmem:[%s2298_s29 + $0x108] sm:$0xff]   ;;  %v2166_v15 = vld [vmem:[%s2298_s29 + $0x140] sm:$0xff]  }
  0x2a   : > { %1950 = vmatpush3.bf16.msra.mxu1 %v2124_v21  ;;  %1929 = vmatprep.subr.bf16.mxu0 %v2125_v22  ;;  %v2161_v12 = vld [vmem:[%s2298_s29 + $0x190] sm:$0xff]   ;;  %v2165_v16 = vld [vmem:[%s2298_s29 + $0x188] sm:$0xff]   ;;  %v2167_v17 = vld [vmem:[%s2298_s29 + $0x1c0] sm:$0xff]  }
  0x2b   : > { %1951 = vmatprep.subr.bf16.mxu1 %v2126_v23  ;;  %v548_v57 = vcombine.high %v544_v51, %v544_v51  ;;  %1454 = vmatprep.mubr.bf16.mxu1 %v547_v54  ;;  %v2168_v18 = vld [vmem:[%s2298_s29 + $0x100] sm:$0xff]   ;;  %v2170_v20 = vld [vmem:[%s2298_s29 + $0x278] sm:$0xff]   ;;  %v2177_v30 = vld [vmem:[%s2298_s29 + $0x2b0] sm:$0xff]  }
  0x2c   : > { %v2169_v21 = vld [vmem:[%s2298_s29 + $0x180] sm:$0xff]   ;;  %v2171_v22 = vld [vmem:[%s2298_s29 + $0x2f8] sm:$0xff]   ;;  %v2190_v41 = vld [vmem:[%s2298_s29 + $0x250] sm:$0xff]  }
  0x2d   : > { %1930 = vmatpush3.bf16.msra.mxu0 %v2127_v24  ;;  %v2172_v23 = vld [vmem:[%s2298_s29 + $0x238] sm:$0xff]   ;;  %v546_v24 = vcombine.high %v530_v19, %v530_v19  ;;  %v2183_v35 = vld [vmem:[%s2298_s29 + $0x2e0] sm:$0xff]   ;;  %v2191_v44 = vld [vmem:[%s2298_s29 + $0x2d0] sm:$0xff]  }
  0x2e   : > { %1952 = vmatpush3.bf16.msra.mxu1 %v2128_v25  ;;  %1931 = vmatprep.subr.bf16.mxu0 %v2129_v26  ;;  %v2174_v25 = vld [vmem:[%s2298_s29 + $0x270] sm:$0xff]   ;;  %v2173_v26 = vld [vmem:[%s2298_s29 + $0x2b8] sm:$0xff]   ;;  %v2184_v36 = vld [vmem:[%s2298_s29 + $0x220] sm:$0xff]  }
  0x2f   : > { %1953 = vmatprep.subr.bf16.mxu1 %v2130_v27  ;;  %v2175_v27 = vld [vmem:[%s2298_s29 + $0x2f0] sm:$0xff]   ;;  %v2185_v38 = vld [vmem:[%s2298_s29 + $0x2a0] sm:$0xff]   ;;  %v2187_v39 = vld [vmem:[%s2298_s29 + $0x2d8] sm:$0xff]  }
  0x30   : > { %v2189_v42 = vld [vmem:[%s2298_s29 + $0x298] sm:$0xff]   ;;  %v2192_v45 = vld [vmem:[%s2298_s29 + $0x210] sm:$0xff]   ;;  %v2194_v46 = vld [vmem:[%s2298_s29 + $0x248] sm:$0xff]  }
  0x31   : > { %1932 = vmatpush3.bf16.msra.mxu0 %v2131_v28  ;;  %v2176_v28 = vld [vmem:[%s2298_s29 + $0x230] sm:$0xff]  }
  0x32   : > { %1954 = vmatpush3.bf16.msra.mxu1 %v2132_v29  ;;  %1933 = vmatprep.subr.bf16.mxu0 %v2133_v31  ;;  %v2178_v29 = vld [vmem:[%s2298_s29 + $0x268] sm:$0xff]   ;;  %v2193_v48 = vld [vmem:[%s2298_s29 + $0x290] sm:$0xff]  }
  0x33   : > { %1955 = vmatprep.subr.bf16.mxu1 %v2134_v32  ;;  %v2179_v31 = vld [vmem:[%s2298_s29 + $0x2e8] sm:$0xff]  }
  0x34   : > { %v2180_v32 = vld [vmem:[%s2298_s29 + $0x228] sm:$0xff]  }
  0x35   : > { %1934 = vmatpush3.bf16.msra.mxu0 %v2135_v33  ;;  %v2182_v33 = vld [vmem:[%s2298_s29 + $0x260] sm:$0xff]  }
  0x36   : > { %1956 = vmatpush3.bf16.msra.mxu1 %v2136_v34  ;;  %1963 = vmatprep.subr.bf16.mxu0 %v2138_v37  ;;  %v2181_v34 = vld [vmem:[%s2298_s29 + $0x2a8] sm:$0xff]   ;;  %v2186_v37 = vld [vmem:[%s2298_s29 + $0x258] sm:$0xff]  }
  0x37   : > { %1985 = vmatprep.subr.bf16.mxu1 %v2139_v40  ;;  %v2188_v40 = vld [vmem:[%s2298_s29 + $0x218] sm:$0xff]  }
  0x38   : > { %1415 = vmatmul.mubr.bf16.vlgmr.msra.gmra.mxu0 %v523_v47  ;;  %v241_v47 = vld [vmem:[%s2293_s25 + $0x8] sm:$0xff] }
  0x39   : > { %1964 = vmatpush3.bf16.msra.mxu0 %v2140_v50  ;;  %1455 = vmatmul.mubr.bf16.vlgmr.msra.gmra.mxu1 %v545_v52  ;;  %v556_v49 = vrot.slane %v241_v47, %v2336_v43  ;;  %v549_v50 = vcombine.high %v241_v47, %v241_v47  ;;  %v2196_v52 = vld [vmem:[%s2298_s29 + $0x208] sm:$0xff]  }
  0x3a   : > { %1965 = vmatprep.subr.bf16.mxu0 %v2142_v53  ;;  %1986 = vmatpush3.bf16.msra.mxu1 %v2141_v55  ;;  %v2198_v55 = vld [vmem:[%s2298_s29 + $0x240] sm:$0xff]  }
  0x3b   : > { %1494 = vmatprep.mubr.bf16.mxu0 %v544_v51  ;;  %1987 = vmatprep.subr.bf16.mxu1 %v2143_v56  ;;  %v2195_v51 = vld [vmem:[%s2298_s29 + $0x2c8] sm:$0xff]   ;;  %v564_v53 = vcombine.high %v556_v49, %v556_v49  ;;  %v2409_v54 = vrot.slane %v549_v50, %v2336_v43 }
  0x3c   : > { %1534 = vmatprep.mubr.bf16.mxu1 %v548_v57  ;;  %v2197_v56 = vld [vmem:[%s2298_s29 + $0x288] sm:$0xff]  }
  0x3d   : > { %1966 = vmatpush3.bf16.msra.mxu0 %v2144_v58  ;;  %v586_v57 = vrot.slane %v564_v53, %v2336_v43  ;;  %v565_v58 = vcombine.high %v2409_v54, %v2409_v54 }
  0x3e   : > { %1967 = vmatprep.subr.bf16.mxu0 %v2146_v59  ;;  %1988 = vmatpush3.bf16.msra.mxu1 %v2145_v60  ;;  %v2199_v59 = vld [vmem:[%s2298_s29 + $0x2c0] sm:$0xff]  }
  0x3f   : > { %1989 = vmatprep.subr.bf16.mxu1 %v2147_v61  ;;  %v2200_v60 = vld [vmem:[%s2298_s29 + $0x200] sm:$0xff]   ;;  %v596_v61 = vcombine.high %v586_v57, %v586_v57 }
  0x41   : > { %1968 = vmatpush3.bf16.msra.mxu0 %v2148_v62  ;;  %v572_v62 = vrot.slane %v556_v49, %v2336_v43 }
  0x42   : > { %1969 = vmatprep.subr.bf16.mxu0 %v2150_v63  ;;  %1990 = vmatpush3.bf16.msra.mxu1 %v2149_v0  ;;  %v2202_v63 = vld [vmem:[%s2298_s29 + $0x378] sm:$0xff]   ;;  %v2201_v0 = vld [vmem:[%s2298_s29 + $0x280] sm:$0xff]  }
  0x43   : > { %1991 = vmatprep.subr.bf16.mxu1 %v2151_v1  ;;  %v593_v1 = vrot.slane %v565_v58, %v2336_v43 }
  0x45   : > { %1970 = vmatpush3.bf16.msra.mxu0 %v2152_v2  ;;  %v2203_v2 = vld [vmem:[%s2298_s29 + $0x3f8] sm:$0xff]  }
  0x46   : > { %1971 = vmatprep.subr.bf16.mxu0 %v2154_v3  ;;  %1992 = vmatpush3.bf16.msra.mxu1 %v2153_v4  ;;  %v2204_v3 = vld [vmem:[%s2298_s29 + $0x338] sm:$0xff]   ;;  %v594_v4 = vcombine.high %v572_v62, %v572_v62 }
  0x47   : > { %1993 = vmatprep.subr.bf16.mxu1 %v2155_v5  ;;  %v2206_v5 = vld [vmem:[%s2298_s29 + $0x370] sm:$0xff]  }
  0x49   : > { %1972 = vmatpush3.bf16.msra.mxu0 %v2156_v6  ;;  %v2205_v6 = vld [vmem:[%s2298_s29 + $0x3b8] sm:$0xff]  }
  0x4a   : > { %1973 = vmatprep.subr.bf16.mxu0 %v2158_v7  ;;  %1994 = vmatpush3.bf16.msra.mxu1 %v2157_v8  ;;  %v597_v7 = vcombine.high %v593_v1, %v593_v1  ;;  %v2207_v8 = vld [vmem:[%s2298_s29 + $0x3f0] sm:$0xff]  }
  0x4b   : > { %1995 = vmatprep.subr.bf16.mxu1 %v2159_v9  ;;  %v2208_v9 = vld [vmem:[%s2298_s29 + $0x330] sm:$0xff]  }
  0x4d   : > { %1974 = vmatpush3.bf16.msra.mxu0 %v2160_v10  ;;  %v2210_v10 = vld [vmem:[%s2298_s29 + $0x368] sm:$0xff]  }
  0x4e   : > { %1975 = vmatprep.subr.bf16.mxu0 %v2162_v11  ;;  %1996 = vmatpush3.bf16.msra.mxu1 %v2161_v12  ;;  %v2209_v11 = vld [vmem:[%s2298_s29 + $0x3b0] sm:$0xff]   ;;  %v2211_v12 = vld [vmem:[%s2298_s29 + $0x3e8] sm:$0xff]  }
  0x4f   : > { %1997 = vmatprep.subr.bf16.mxu1 %v2163_v13  ;;  %v2212_v13 = vld [vmem:[%s2298_s29 + $0x328] sm:$0xff]  }
  0x51   : > { %1976 = vmatpush3.bf16.msra.mxu0 %v2164_v14  ;;  %v2214_v14 = vld [vmem:[%s2298_s29 + $0x360] sm:$0xff]  }
  0x52   : > { %1977 = vmatprep.subr.bf16.mxu0 %v2166_v15  ;;  %1998 = vmatpush3.bf16.msra.mxu1 %v2165_v16  ;;  %v2213_v15 = vld [vmem:[%s2298_s29 + $0x3a8] sm:$0xff]   ;;  %v2215_v16 = vld [vmem:[%s2298_s29 + $0x3e0] sm:$0xff]  }
  0x53   : > { %1999 = vmatprep.subr.bf16.mxu1 %v2167_v17  ;;  %v2216_v17 = vld [vmem:[%s2298_s29 + $0x320] sm:$0xff]  }
  0x55   : > { %1978 = vmatpush3.bf16.msra.mxu0 %v2168_v18  ;;  %v2218_v18 = vld [vmem:[%s2298_s29 + $0x358] sm:$0xff]  }
  0x56   : > { %2007 = vmatprep.subr.bf16.mxu0 %v2170_v20  ;;  %2000 = vmatpush3.bf16.msra.mxu1 %v2169_v21  ;;  %v2219_v20 = vld [vmem:[%s2298_s29 + $0x3d8] sm:$0xff]  }
  0x57   : > { %2029 = vmatprep.subr.bf16.mxu1 %v2171_v22  ;;  %v2220_v21 = vld [vmem:[%s2298_s29 + $0x318] sm:$0xff]   ;;  %v2222_v22 = vld [vmem:[%s2298_s29 + $0x350] sm:$0xff]  }
  0x58   : > { %1495 = vmatmul.mubr.bf16.vlgmr.msra.gmra.mxu0 %v530_v19  ;;  %v2217_v19 = vld [vmem:[%s2298_s29 + $0x3a0] sm:$0xff]  }
  0x59   : > { %2008 = vmatpush3.bf16.msra.mxu0 %v2172_v23  ;;  %1535 = vmatmul.mubr.bf16.vlgmr.msra.gmra.mxu1 %v546_v24  ;;  %v2221_v23 = vld [vmem:[%s2298_s29 + $0x398] sm:$0xff]   ;;  %v2223_v24 = vld [vmem:[%s2298_s29 + $0x3d0] sm:$0xff]  }
  0x5a   : > { %2009 = vmatprep.subr.bf16.mxu0 %v2174_v25  ;;  %2030 = vmatpush3.bf16.msra.mxu1 %v2173_v26  ;;  %v2224_v25 = vld [vmem:[%s2298_s29 + $0x310] sm:$0xff]   ;;  %v2226_v26 = vld [vmem:[%s2298_s29 + $0x348] sm:$0xff]  }
  0x5b   : > { %2031 = vmatprep.subr.bf16.mxu1 %v2175_v27  ;;  %1574 = vmatprep.mubr.bf16.mxu0 %v586_v57  ;;  %v2225_v27 = vld [vmem:[%s2298_s29 + $0x390] sm:$0xff]  }
  0x5c   : > { %1614 = vmatprep.mubr.bf16.mxu1 %v596_v61 }
  0x5d   : > { %2010 = vmatpush3.bf16.msra.mxu0 %v2176_v28  ;;  %v2227_v28 = vld [vmem:[%s2298_s29 + $0x3c8] sm:$0xff]  }
  0x5e   : > { %2011 = vmatprep.subr.bf16.mxu0 %v2178_v29  ;;  %2032 = vmatpush3.bf16.msra.mxu1 %v2177_v30  ;;  %v2228_v29 = vld [vmem:[%s2298_s29 + $0x308] sm:$0xff]   ;;  %v2230_v30 = vld [vmem:[%s2298_s29 + $0x340] sm:$0xff]  }
  0x5f   : > { %2033 = vmatprep.subr.bf16.mxu1 %v2179_v31  ;;  %v2229_v31 = vld [vmem:[%s2298_s29 + $0x388] sm:$0xff]  }
  0x61   : > { %2012 = vmatpush3.bf16.msra.mxu0 %v2180_v32  ;;  %v2231_v32 = vld [vmem:[%s2298_s29 + $0x3c0] sm:$0xff]  }
  0x62   : > { %2013 = vmatprep.subr.bf16.mxu0 %v2182_v33  ;;  %2034 = vmatpush3.bf16.msra.mxu1 %v2181_v34  ;;  %v2232_v33 = vld [vmem:[%s2298_s29 + $0x300] sm:$0xff]   ;;  %v579_v34 = vrot.slane %v2409_v54, %v2336_v43 }
  0x63   : > { %2035 = vmatprep.subr.bf16.mxu1 %v2183_v35  ;;  %v2233_v35 = vld [vmem:[%s2298_s29 + $0x380] sm:$0xff]  }
  0x65   : > { %2014 = vmatpush3.bf16.msra.mxu0 %v2184_v36  ;;  %v595_v36 = vcombine.high %v579_v34, %v579_v34 }
  0x66   : > { %2015 = vmatprep.subr.bf16.mxu0 %v2186_v37  ;;  %2036 = vmatpush3.bf16.msra.mxu1 %v2185_v38 }
  0x67   : > { %2037 = vmatprep.subr.bf16.mxu1 %v2187_v39 }
  0x69   : > { %2016 = vmatpush3.bf16.msra.mxu0 %v2188_v40 }
  0x6a   : > { %2017 = vmatprep.subr.bf16.mxu0 %v2190_v41  ;;  %2038 = vmatpush3.bf16.msra.mxu1 %v2189_v42 }
  0x6b   : > { %2039 = vmatprep.subr.bf16.mxu1 %v2191_v44 }
  0x6d   : > { %2018 = vmatpush3.bf16.msra.mxu0 %v2192_v45 }
  0x6e   : > { %2019 = vmatprep.subr.bf16.mxu0 %v2194_v46  ;;  %2040 = vmatpush3.bf16.msra.mxu1 %v2193_v48 }
  0x6f   : > { %2041 = vmatprep.subr.bf16.mxu1 %v2195_v51 }
  0x71   : > { %2020 = vmatpush3.bf16.msra.mxu0 %v2196_v52 }
  0x72   : > { %2021 = vmatprep.subr.bf16.mxu0 %v2198_v55  ;;  %2042 = vmatpush3.bf16.msra.mxu1 %v2197_v56 }
  0x73   : > { %2043 = vmatprep.subr.bf16.mxu1 %v2199_v59 }
  0x75   : > { %2022 = vmatpush3.bf16.msra.mxu0 %v2200_v60 }
  0x76   : > { %2051 = vmatprep.subr.bf16.mxu0 %v2202_v63  ;;  %2044 = vmatpush3.bf16.msra.mxu1 %v2201_v0 }
  0x77   : > { %2073 = vmatprep.subr.bf16.mxu1 %v2203_v2 }
  0x78   : > { %1575 = vmatmul.mubr.bf16.vlgmr.msra.gmra.mxu0 %v572_v62 }
  0x79   : > { %2052 = vmatpush3.bf16.msra.mxu0 %v2204_v3  ;;  %1654 = vmatprep.mubr.bf16.mxu0 %v593_v1 }
  0x7a   : > { %1615 = vmatmul.mubr.bf16.vlgmr.msra.gmra.mxu1 %v594_v4  ;;  %2053 = vmatprep.subr.bf16.mxu0 %v2206_v5 }
  0x7b   : > { %2074 = vmatpush3.bf16.msra.mxu1 %v2205_v6  ;;  %1694 = vmatprep.mubr.bf16.mxu1 %v597_v7 }
  0x7c   : > { %2075 = vmatprep.subr.bf16.mxu1 %v2207_v8 }
  0x7d   : > { %2054 = vmatpush3.bf16.msra.mxu0 %v2208_v9 }
  0x7e   : > { %2055 = vmatprep.subr.bf16.mxu0 %v2210_v10 }
  0x7f   : > { %2076 = vmatpush3.bf16.msra.mxu1 %v2209_v11 }
  0x80   : > { %2077 = vmatprep.subr.bf16.mxu1 %v2211_v12 }
  0x81   : > { %2056 = vmatpush3.bf16.msra.mxu0 %v2212_v13 }
  0x82   : > { %2057 = vmatprep.subr.bf16.mxu0 %v2214_v14 }
  0x83   : > { %2078 = vmatpush3.bf16.msra.mxu1 %v2213_v15 }
  0x84   : > { %2079 = vmatprep.subr.bf16.mxu1 %v2215_v16  ;;  %v239_v16 = vld [vmem:[#allocation2] sm:$0x3] }
  0x85   : > { %2058 = vmatpush3.bf16.msra.mxu0 %v2216_v17 }
  0x86   : > { %2059 = vmatprep.subr.bf16.mxu0 %v2218_v18 }
  0x87   : > { %2080 = vmatpush3.bf16.msra.mxu1 %v2217_v19 }
  0x88   : > { %2081 = vmatprep.subr.bf16.mxu1 %v2219_v20 }
  0x89   : > { %2060 = vmatpush3.bf16.msra.mxu0 %v2220_v21 }
  0x8a   : > { %2061 = vmatprep.subr.bf16.mxu0 %v2222_v22 }
  0x8b   : > { %2082 = vmatpush3.bf16.msra.mxu1 %v2221_v23 }
  0x8c   : > { %2083 = vmatprep.subr.bf16.mxu1 %v2223_v24 }
  0x8d   : > { %2062 = vmatpush3.bf16.msra.mxu0 %v2224_v25 }
  0x8e   : > { %2063 = vmatprep.subr.bf16.mxu0 %v2226_v26 }
  0x8f   : > { %2084 = vmatpush3.bf16.msra.mxu1 %v2225_v27 }
  0x90   : > { %2085 = vmatprep.subr.bf16.mxu1 %v2227_v28 }
  0x91   : > { %2064 = vmatpush3.bf16.msra.mxu0 %v2228_v29 }
  0x92   : > { %2065 = vmatprep.subr.bf16.mxu0 %v2230_v30 }
  0x93   : > { %2086 = vmatpush3.bf16.msra.mxu1 %v2229_v31 }
  0x94   : > { %2087 = vmatprep.subr.bf16.mxu1 %v2231_v32 }
  0x95   : > { %2066 = vmatpush3.bf16.msra.mxu0 %v2232_v33 }
  0x97   : > { %2088 = vmatpush3.bf16.msra.mxu1 %v2233_v35 }
  0x98   : > { %1655 = vmatmul.mubr.bf16.vlgmr.msra.gmra.mxu0 %v579_v34 }
  0x9a   : > { %1695 = vmatmul.mubr.bf16.vlgmr.msra.gmra.mxu1 %v595_v36 }
  0xf8   : > { %v1935_v37 = vpop.f32.mrf.mxu0 }
  0xf9   : > { %v1957_v38 = vpop.f32.mrf.mxu1 }
  0xfa   : > { %v1936_v39 = vpop.f32.mrf.mxu0 }
  0xfb   : > { %v1937_v40 = vadd.f32 %v1936_v39, %v1935_v37  ;;  %v1958_v41 = vpop.f32.mrf.mxu1 }
  0xfc   : > { %v1938_v42 = vpop.f32.mrf.mxu0  ;;  %v1959_v44 = vadd.f32 %v1958_v41, %v1957_v38 }
  0xfd   : > { %v1960_v45 = vpop.f32.mrf.mxu1 }
  0xfe   : > { %v1939_v46 = vpop.f32.mrf.mxu0  ;;  %v1457_v47 = vadd.f32 %v1959_v44, %v1937_v40 }
  0xff   : > { %v1961_v48 = vpop.f32.mrf.mxu1 }
 0x118   : > { %v1979_v43 = vpop.f32.mrf.mxu0 }
 0x119   : > { %v2001_v49 = vpop.f32.mrf.mxu1 }
 0x11a   : > { %v1980_v50 = vpop.f32.mrf.mxu0 }
 0x11b   : > { %v2002_v51 = vpop.f32.mrf.mxu1  ;;  %v1981_v0 = vadd.f32 %v1980_v50, %v1979_v43 }
 0x11c   : > { %v1982_v52 = vpop.f32.mrf.mxu0  ;;  %v2003_v2 = vadd.f32 %v2002_v51, %v2001_v49 }
 0x11d   : > { %v2004_v53 = vpop.f32.mrf.mxu1  ;;  %v1497_v1 = vadd.f32 %v1981_v0, %v1457_v47 }
 0x11e   : > { %v1983_v54 = vpop.f32.mrf.mxu0 }
 0x11f   : > { %v2005_v55 = vpop.f32.mrf.mxu1  ;;  %v1537_v4 = vadd.f32 %v2003_v2, %v1497_v1 }
 0x138   : > { %v2023_v56 = vpop.f32.mrf.mxu0 }
 0x13a   : > { %v2045_v57 = vpop.f32.mrf.mxu1  ;;  %v2024_v58 = vpop.f32.mrf.mxu0 }
 0x13b   : > { %v2025_v3 = vadd.f32 %v2024_v58, %v2023_v56 }
 0x13c   : > { %v2046_v59 = vpop.f32.mrf.mxu1  ;;  %v2026_v60 = vpop.f32.mrf.mxu0 }
 0x13d   : > { %v1577_v5 = vadd.f32 %v2025_v3, %v1537_v4  ;;  %v2047_v6 = vadd.f32 %v2046_v59, %v2045_v57 }
 0x13e   : > { %v2048_v61 = vpop.f32.mrf.mxu1  ;;  %v2027_v62 = vpop.f32.mrf.mxu0 }
 0x13f   : > { %v1617_v10 = vadd.f32 %v2047_v6, %v1577_v5 }
 0x140   : > { %v2049_v63 = vpop.f32.mrf.mxu1 }
 0x158   : > { %v2067_v7 = vpop.f32.mrf.mxu0 }
 0x15a   : > { %v2089_v8 = vpop.f32.mrf.mxu1  ;;  %v2068_v9 = vpop.f32.mrf.mxu0 }
 0x15b   : > { %v2069_v11 = vadd.f32 %v2068_v9, %v2067_v7 }
 0x15c   : > { %v2090_v12 = vpop.f32.mrf.mxu1  ;;  %v2070_v13 = vpop.f32.mrf.mxu0 }
 0x15d   : > { %v1657_v14 = vadd.f32 %v2069_v11, %v1617_v10  ;;  %v2091_v15 = vadd.f32 %v2090_v12, %v2089_v8 }
 0x15e   : > { %v2092_v17 = vpop.f32.mrf.mxu1  ;;  %v2071_v18 = vpop.f32.mrf.mxu0 }
 0x15f   : > { %v1697_v19 = vadd.f32 %v2091_v15, %v1657_v14  ;;  %1707 = sbr.rel (%p1913_p6) target bundleno = 511 (0x1ff), region = 48 }
 0x160   : > { %v2093_v20 = vpop.f32.mrf.mxu1 }
 0x161   : > { %v1702_v21 = vadd.f32 %v1697_v19, %v239_v16 }
 0x163   : > { %1703 = vst [vmem:[#allocation2] sm:$0x3] %v1702_v21 }
 0x164   : > { %v1914_v23 = vld [vmem:[%s2470_s2] ss:$0 sm:$0xff]  ;;  %vm1726_vm0 = vcmask 1041408   ;;  %v1916_v29 = vld [vmem:[#allocation3] ss:$0 sm:$0xff]  ;;  %vm1738_vm1 = vcmask 1024  }
 0x165   : > { %v1915_v25 = vld [vmem:[%s2471_s3] ss:$0 sm:$0xff] }
 0x16a   : > { %v1708_v22 = vld [vmem:[#allocation2] sm:$0x3] }
 0x16b   : > { %v1716_v24 = vadd.f32 %v1914_v23, %v1708_v22 }
 0x16d   : > { %v1717_v26 = vmax.f32 %v1716_v24, 0.0 }
 0x16f   : > { %v1725_v27 = vmul.f32 %v1915_v25, %v1717_v26 }
 0x171   : > { %v1727_v28 = vsel %vm1726_vm0, %v1725_v27, 0.0 }
 0x172   : > { %1728 = vadd.xlane.f32.xlu0 %v1727_v28 }
 0x1fb   : > { %v1729_v30 = vpop.xlane.xlu0 %1728 }
 0x1fc   : > { %v1737_v31 = vadd.f32 %v1916_v29, %v1729_v30 }
 0x1fe   : > { %1739 = vst.msk [vmem:[%s2473_s5] sm:$0x3] %vm1738_vm1, %v1737_v31 }
 0x1ff PF: > { %s17_s20 = sadd.s32 1, %s2241_s20  }
 0x200   : > { %p14_p7 = scmp.ge.s32.totalorder %s17_s20, 4  }
 0x202   :  { %16 = sbr.rel (!%p14_p7) target bundleno = 3 (0x3), region = 77 }

</bundles_post_ra>
